<compile_context>
chip_gen: v6e
topology: v6e:2x2x1
jax: 0.10.0
libtpu: 0.0.40
codegen_flags: <defaults>
</compile_context>

<pallas_src>
import functools

import jax
import jax.numpy as jnp
from jax import lax
from jax.experimental import pallas as pl
from jax.experimental.pallas import tpu as pltpu


def _round_up(x, m):
    return (x + m - 1) // m * m


def _gru_kernel(x_ref, wih_ref, whh_ref, bfold_ref, bhn_ref,
                out_ref, hN_ref, gi_scr, *, seq_len, chunk, unroll):
    """One T-chunk of a single-layer GRU (gate order r, z, n — PyTorch).

    x_ref     : (Tc, Bp, Hp)   bf16  embedded inputs for this chunk
    wih_ref   : (Hp, 3Hp)      bf16  input->gates weights (gate-blocked, padded)
    whh_ref   : (Hp, 3Hp)      bf16  hidden->gates weights
    bfold_ref : (1, 3Hp)       f32   b_ih (all gates) + b_hh (r, z gates only)
    bhn_ref   : (1, Hp)        f32   b_hn (n-gate hidden bias)
    out_ref   : (Tc, Bp, Hp)   f32   per-step hidden states for this chunk
    hN_ref    : (Bp, Hp)       f32   running / final hidden state (grid-resident)
    gi_scr    : (Tc, Bp, 3Hp)  f32   scratch: precomputed input projections
    """
    Tc, Bp, Hp = out_ref.shape
    G = 3 * Hp

    # ---- hoisted input projection: one big MXU matmul for the whole chunk.
    x2d = x_ref[...].reshape(Tc * Bp, Hp)
    gi = jnp.dot(x2d, wih_ref[...], preferred_element_type=jnp.float32)
    gi = gi + bfold_ref[...]                        # all loop-invariant biases
    gi_scr[...] = gi.reshape(Tc, Bp, G)

    # ---- zero initial hidden state on the first chunk.
    @pl.when(pl.program_id(0) == 0)
    def _():
        hN_ref[...] = jnp.zeros_like(hN_ref)

    # Loop-invariant loads / broadcasts, hoisted off the serial chain.
    whh = whh_ref[...]                                        # (Hp, 3Hp) bf16
    bhn = jnp.broadcast_to(bhn_ref[...], (Bp, Hp))            # (Bp, Hp)  f32
    base = pl.program_id(0) * chunk

    def step(t, h_prev):
        # Only the hidden->gates matmul sits on the serial dependence chain.
        gh = jnp.dot(h_prev.astype(whh.dtype), whh,
                     preferred_element_type=jnp.float32)
        gi_t = gi_scr[t]                                      # (Bp, 3Hp) f32
        r = jax.nn.sigmoid(gi_t[:, 0:Hp] + gh[:, 0:Hp])
        z = jax.nn.sigmoid(gi_t[:, Hp:2 * Hp] + gh[:, Hp:2 * Hp])
        n = jnp.tanh(gi_t[:, 2 * Hp:G] + r * (gh[:, 2 * Hp:G] + bhn))
        h_new = (1.0 - z) * n + z * h_prev
        out_ref[t] = h_new
        if seq_len % chunk != 0:
            # Padded tail timesteps must not advance the hidden state.
            h_new = jnp.where(base + t < seq_len, h_new, h_prev)
        return h_new

    h_last = lax.fori_loop(0, Tc, step, hN_ref[...], unroll=unroll)
    hN_ref[...] = h_last


def gru_forward(embedded_tbh, w_ih, w_hh, b_ih, b_hh):
    """embedded_tbh: (T, B, H) f32 time-major.  PyTorch layout weights:
       w_ih, w_hh: (3H, H); b_ih, b_hh: (3H,).  Returns ((T,B,H), (B,H)) f32."""
    T, B, H = embedded_tbh.shape

    Hp = _round_up(H, 128)          # lane-dense gates / outputs
    Bp = _round_up(B, 8)            # sublane-aligned batch

    # Time-chunk: keep the per-chunk input-projection scratch (Tc*Bp*3Hp f32)
    # around 4 MiB so double-buffered chunk DMAs + scratch fit easily in VMEM.
    bytes_per_t = Bp * 3 * Hp * 4
    Tc = max(8, ((4 << 20) // bytes_per_t) // 8 * 8)
    Tc = min(Tc, 128, _round_up(T, 8))
    Tp = _round_up(T, Tc)
    n_chunks = Tp // Tc

    # ---- gate-blocked, zero-padded, transposed weights: (Hp, 3Hp) bf16.
    def pad_gate_w(w):
        w3 = jnp.transpose(w.reshape(3, H, H), (0, 2, 1))            # (3, Hin, Hout)
        w3p = jnp.zeros((3, Hp, Hp), jnp.float32).at[:, :H, :H].set(w3)
        return jnp.transpose(w3p, (1, 0, 2)).reshape(Hp, 3 * Hp).astype(jnp.bfloat16)

    def pad_gate_b(b):
        b3p = jnp.zeros((3, Hp), jnp.float32).at[:, :H].set(b.reshape(3, H))
        return b3p                                                    # (3, Hp)

    wih = pad_gate_w(w_ih)
    whh = pad_gate_w(w_hh)
    bih3 = pad_gate_b(b_ih)                                           # (3, Hp)
    bhh3 = pad_gate_b(b_hh)                                           # (3, Hp)

    # Fold b_ih (all gates) + b_hh (r, z) into the hoisted chunk matmul bias;
    # b_hn stays separate (it sits inside the r* multiply of the n gate).
    bfold = (bih3 + bhh3.at[2].set(0.0)).reshape(1, 3 * Hp)           # (1, 3Hp)
    bhn = bhh3[2].reshape(1, Hp)                                      # (1, Hp)

    # ---- padded, bf16 time-major inputs (matmul operands only; math is f32).
    x = jnp.pad(embedded_tbh, ((0, Tp - T), (0, Bp - B), (0, Hp - H)))
    x = x.astype(jnp.bfloat16)

    kernel = functools.partial(_gru_kernel, seq_len=T, chunk=Tc,
                               unroll=min(8, Tc))

    out_tbh, h_final = pl.pallas_call(
        kernel,
        out_shape=(
            jax.ShapeDtypeStruct((Tp, Bp, Hp), jnp.float32),
            jax.ShapeDtypeStruct((Bp, Hp), jnp.float32),
        ),
        grid=(n_chunks,),
        in_specs=[
            pl.BlockSpec((Tc, Bp, Hp), lambda t: (t, 0, 0)),     # x chunk
            pl.BlockSpec((Hp, 3 * Hp), lambda t: (0, 0)),        # W_ih
            pl.BlockSpec((Hp, 3 * Hp), lambda t: (0, 0)),        # W_hh
            pl.BlockSpec((1, 3 * Hp), lambda t: (0, 0)),         # folded bias
            pl.BlockSpec((1, Hp), lambda t: (0, 0)),             # b_hn
        ],
        out_specs=(
            pl.BlockSpec((Tc, Bp, Hp), lambda t: (t, 0, 0)),     # per-step h
            pl.BlockSpec((Bp, Hp), lambda t: (0, 0)),            # final hidden
        ),
        scratch_shapes=[pltpu.VMEM((Tc, Bp, 3 * Hp), jnp.float32)],
        compiler_params=pltpu.CompilerParams(
            dimension_semantics=("arbitrary",)),
    )(x, wih, whh, bfold, bhn)

    return out_tbh[:T, :B, :H], h_final[:B, :H]


class EncoderParams:
    """Deterministic parameter construction matching nn.Embedding + nn.GRU shapes."""

    def __init__(self, key, input_size, hidden_size):
        k_emb, k_wih, k_whh, k_bih, k_bhh = jax.random.split(key, 5)
        H = hidden_size
        bound = 1.0 / jnp.sqrt(H)
        # nn.Embedding default: N(0, 1)
        self.embedding = jax.random.normal(k_emb, (input_size, H), jnp.float32)
        # nn.GRU default: U(-1/sqrt(H), 1/sqrt(H)); gate order (r, z, n)
        self.w_ih = jax.random.uniform(k_wih, (3 * H, H), jnp.float32, -bound, bound)
        self.w_hh = jax.random.uniform(k_whh, (3 * H, H), jnp.float32, -bound, bound)
        self.b_ih = jax.random.uniform(k_bih, (3 * H,), jnp.float32, -bound, bound)
        self.b_hh = jax.random.uniform(k_bhh, (3 * H,), jnp.float32, -bound, bound)
        self.hidden_size = H


@jax.jit
def encoder_forward(input_ids, embedding, w_ih, w_hh, b_ih, b_hh):
    """input_ids: (B, T) int32.  Returns (output (B,T,H), hidden (1,B,H))."""
    # Embedding gather directly in time-major order (transpose the ids, not the
    # activations).  Dropout is identity in eval mode.
    embedded_tbh = jnp.take(embedding, jnp.transpose(input_ids), axis=0)  # (T,B,H)
    out_tbh, h_final = gru_forward(embedded_tbh, w_ih, w_hh, b_ih, b_hh)
    output = jnp.transpose(out_tbh, (1, 0, 2))     # (B, T, H), batch_first
    hidden = h_final[None, :, :]                   # (1, B, H)
    return output, hidden


def _reference_encoder(input_ids, embedding, w_ih, w_hh, b_ih, b_hh):
    """Pure-JAX reference with matching bf16 matmul-operand rounding."""
    H = embedding.shape[1]
    f32 = lambda a: a.astype(jnp.bfloat16).astype(jnp.float32)
    emb = jnp.take(embedding, input_ids, axis=0)           # (B, T, H)
    B, T, _ = emb.shape
    wih = f32(w_ih)
    whh = f32(w_hh)
    h = jnp.zeros((B, H), jnp.float32)
    outs = []
    for t in range(T):
        gi = f32(emb[:, t, :]) @ wih.T + b_ih
        gh = f32(h) @ whh.T + b_hh
        r = jax.nn.sigmoid(gi[:, :H] + gh[:, :H])
        z = jax.nn.sigmoid(gi[:, H:2 * H] + gh[:, H:2 * H])
        n = jnp.tanh(gi[:, 2 * H:] + r * gh[:, 2 * H:])
        h = (1.0 - z) * n + z * h
        outs.append(h)
    return jnp.stack(outs, axis=1), h[None]


if __name__ == "__main__":
    key = jax.random.PRNGKey(0)
    k_params, k_input = jax.random.split(key)

    input_size = 10      # vocab size
    hidden_size = 32
    batch = 2
    seq = 8

    params = EncoderParams(k_params, input_size, hidden_size)
    input_ids = jax.random.randint(k_input, (batch, seq), 0, input_size, jnp.int32)

    output, hidden = encoder_forward(
        input_ids, params.embedding, params.w_ih, params.w_hh,
        params.b_ih, params.b_hh)
    jax.block_until_ready((output, hidden))

    assert output.shape == (batch, seq, hidden_size)
    assert hidden.shape == (1, batch, hidden_size)
    assert jnp.all(jnp.isfinite(output)) and jnp.all(jnp.isfinite(hidden))

    ref_out, ref_hid = _reference_encoder(
        input_ids, params.embedding, params.w_ih, params.w_hh,
        params.b_ih, params.b_hh)
    assert jnp.allclose(output, ref_out, atol=2e-3, rtol=2e-3), \
        float(jnp.max(jnp.abs(output - ref_out)))
    assert jnp.allclose(hidden, ref_hid, atol=2e-3, rtol=2e-3)

    print("KERNEL_OK")
</pallas_src>

<mosaic_0001>
module attributes {stable_mosaic.version = 11 : i64} {
  func.func @_gru_kernel(%arg0: i32, %arg1: memref<8x8x128xbf16, #tpu.memory_space<vmem>>, %arg2: memref<128x384xbf16, #tpu.memory_space<vmem>>, %arg3: memref<128x384xbf16, #tpu.memory_space<vmem>>, %arg4: memref<1x384xf32, #tpu.memory_space<vmem>>, %arg5: memref<1x128xf32, #tpu.memory_space<vmem>>, %arg6: memref<8x8x128xf32, #tpu.memory_space<vmem>>, %arg7: memref<8x128xf32, #tpu.memory_space<vmem>>, %arg8: memref<8x8x384xf32, #tpu.memory_space<vmem>>) attributes {dimension_semantics = [#tpu.dimension_semantics<arbitrary>], iteration_bounds = array<i64: 1>, scalar_prefetch = 0 : i64, scratch_operands = 1 : i64, tpu.core_type = #tpu.core_type<tc>, window_params = [{transform_indices = @transform_0, window_bounds = array<i64: 8, 8, 128>}, {pipeline_mode = #tpu.pipeline_mode<synchronous>, transform_indices = @transform_1, window_bounds = array<i64: 128, 384>}, {pipeline_mode = #tpu.pipeline_mode<synchronous>, transform_indices = @transform_2, window_bounds = array<i64: 128, 384>}, {pipeline_mode = #tpu.pipeline_mode<synchronous>, transform_indices = @transform_3, window_bounds = array<i64: 1, 384>}, {pipeline_mode = #tpu.pipeline_mode<synchronous>, transform_indices = @transform_4, window_bounds = array<i64: 1, 128>}, {transform_indices = @transform_5, window_bounds = array<i64: 8, 8, 128>}, {pipeline_mode = #tpu.pipeline_mode<synchronous>, transform_indices = @transform_6, window_bounds = array<i64: 8, 128>}]} {
    %c0 = arith.constant 0 : index
    %c0_0 = arith.constant 0 : index
    %c0_1 = arith.constant 0 : index
    %0 = vector.load %arg1[%c0, %c0_0, %c0_1] : memref<8x8x128xbf16, #tpu.memory_space<vmem>>, vector<8x8x128xbf16>
    %1 = vector.shape_cast %0 : vector<8x8x128xbf16> to vector<64x128xbf16>
    %c0_2 = arith.constant 0 : index
    %c0_3 = arith.constant 0 : index
    %2 = vector.load %arg2[%c0_2, %c0_3] : memref<128x384xbf16, #tpu.memory_space<vmem>>, vector<128x384xbf16>
    %cst = arith.constant dense<0.000000e+00> : vector<64x384xf32>
    %3 = tpu.matmul %1, %2, %cst {dimension_numbers = #tpu.dot_dimension_numbers<[1], [0], [0], [1], [0, 0, 1, 1], [], []>} : vector<64x128xbf16>, vector<128x384xbf16>, vector<64x384xf32> -> vector<64x384xf32>
    %c0_4 = arith.constant 0 : index
    %c0_5 = arith.constant 0 : index
    %4 = vector.load %arg4[%c0_4, %c0_5] : memref<1x384xf32, #tpu.memory_space<vmem>>, vector<1x384xf32>
    %5 = vector.broadcast %4 : vector<1x384xf32> to vector<64x384xf32>
    %6 = arith.addf %3, %5 : vector<64x384xf32>
    %7 = vector.shape_cast %6 : vector<64x384xf32> to vector<8x8x384xf32>
    %c0_6 = arith.constant 0 : index
    %c0_7 = arith.constant 0 : index
    %c0_8 = arith.constant 0 : index
    %8 = vector.load %arg8[%c0_6, %c0_7, %c0_8] : memref<8x8x384xf32, #tpu.memory_space<vmem>>, vector<8x8x384xf32>
    tpu.vector_store %arg8[%c0_6, %c0_7, %c0_8], %7 {strides = array<i32>} : memref<8x8x384xf32, #tpu.memory_space<vmem>>, vector<8x8x384xf32>,
    %c0_i32 = arith.constant 0 : i32
    %9 = arith.cmpi eq, %arg0, %c0_i32 : i32
    %10 = arith.extui %9 : i1 to i32
    %c0_i32_9 = arith.constant 0 : i32
    %11 = arith.cmpi ne, %10, %c0_i32_9 : i32
    scf.if %11 {
      %cst_83 = arith.constant 0.000000e+00 : f32
      %306 = vector.broadcast %cst_83 : f32 to vector<8x128xf32>
      %c0_84 = arith.constant 0 : index
      %c0_85 = arith.constant 0 : index
      %307 = vector.load %arg7[%c0_84, %c0_85] : memref<8x128xf32, #tpu.memory_space<vmem>>, vector<8x128xf32>
      tpu.vector_store %arg7[%c0_84, %c0_85], %306 {strides = array<i32>} : memref<8x128xf32, #tpu.memory_space<vmem>>, vector<8x128xf32>,
    } else {
    }
    %c0_10 = arith.constant 0 : index
    %c0_11 = arith.constant 0 : index
    %12 = vector.load %arg3[%c0_10, %c0_11] : memref<128x384xbf16, #tpu.memory_space<vmem>>, vector<128x384xbf16>
    %c0_12 = arith.constant 0 : index
    %c0_13 = arith.constant 0 : index
    %13 = vector.load %arg5[%c0_12, %c0_13] : memref<1x128xf32, #tpu.memory_space<vmem>>, vector<1x128xf32>
    %14 = vector.shape_cast %13 : vector<1x128xf32> to vector<1x128xf32>
    %15 = vector.broadcast %14 : vector<1x128xf32> to vector<8x128xf32>
    %c0_14 = arith.constant 0 : index
    %c0_15 = arith.constant 0 : index
    %16 = vector.load %arg7[%c0_14, %c0_15] : memref<8x128xf32, #tpu.memory_space<vmem>>, vector<8x128xf32>
    %c0_i32_16 = arith.constant 0 : i32
    %17 = arith.truncf %16 : vector<8x128xf32> to vector<8x128xbf16>
    %cst_17 = arith.constant dense<0.000000e+00> : vector<8x384xf32>
    %18 = tpu.matmul %17, %12, %cst_17 {dimension_numbers = #tpu.dot_dimension_numbers<[1], [0], [0], [1], [0, 0, 1, 1], [], []>} : vector<8x128xbf16>, vector<128x384xbf16>, vector<8x384xf32> -> vector<8x384xf32>
    %19 = arith.index_cast %c0_i32_16 : i32 to index
    %c0_18 = arith.constant 0 : index
    %c0_19 = arith.constant 0 : index
    %20 = vector.load %arg8[%19, %c0_18, %c0_19] : memref<8x8x384xf32, #tpu.memory_space<vmem>>, vector<1x8x384xf32>
    %21 = vector.shape_cast %20 : vector<1x8x384xf32> to vector<8x384xf32>
    %22 = vector.extract_strided_slice %21 {offsets = [0, 0], sizes = [8, 128], strides = [1, 1]} : vector<8x384xf32> to vector<8x128xf32>
    %23 = vector.extract_strided_slice %18 {offsets = [0, 0], sizes = [8, 128], strides = [1, 1]} : vector<8x384xf32> to vector<8x128xf32>
    %24 = arith.addf %22, %23 : vector<8x128xf32>
    %25 = arith.negf %24 : vector<8x128xf32>
    %26 = math.exp %25 : vector<8x128xf32>
    %cst_20 = arith.constant 1.000000e+00 : f32
    %27 = vector.broadcast %cst_20 : f32 to vector<8x128xf32>
    %28 = arith.addf %27, %26 : vector<8x128xf32>
    %29 = arith.divf %27, %28 : vector<8x128xf32>
    %30 = vector.extract_strided_slice %21 {offsets = [0, 128], sizes = [8, 128], strides = [1, 1]} : vector<8x384xf32> to vector<8x128xf32>
    %31 = vector.extract_strided_slice %18 {offsets = [0, 128], sizes = [8, 128], strides = [1, 1]} : vector<8x384xf32> to vector<8x128xf32>
    %32 = arith.addf %30, %31 : vector<8x128xf32>
    %33 = arith.negf %32 : vector<8x128xf32>
    %34 = math.exp %33 : vector<8x128xf32>
    %cst_21 = arith.constant 1.000000e+00 : f32
    %35 = vector.broadcast %cst_21 : f32 to vector<8x128xf32>
    %36 = arith.addf %35, %34 : vector<8x128xf32>
    %37 = arith.divf %35, %36 : vector<8x128xf32>
    %38 = vector.extract_strided_slice %21 {offsets = [0, 256], sizes = [8, 128], strides = [1, 1]} : vector<8x384xf32> to vector<8x128xf32>
    %39 = vector.extract_strided_slice %18 {offsets = [0, 256], sizes = [8, 128], strides = [1, 1]} : vector<8x384xf32> to vector<8x128xf32>
    %40 = arith.addf %39, %15 : vector<8x128xf32>
    %41 = arith.mulf %29, %40 : vector<8x128xf32>
    %42 = arith.addf %38, %41 : vector<8x128xf32>
    %43 = math.tanh %42 : vector<8x128xf32>
    %cst_22 = arith.constant 1.000000e+00 : f32
    %44 = vector.broadcast %cst_22 : f32 to vector<8x128xf32>
    %45 = arith.subf %44, %37 : vector<8x128xf32>
    %46 = arith.mulf %45, %43 : vector<8x128xf32>
    %47 = arith.mulf %37, %16 : vector<8x128xf32>
    %48 = arith.addf %46, %47 : vector<8x128xf32>
    %49 = arith.index_cast %c0_i32_16 : i32 to index
    %c0_23 = arith.constant 0 : index
    %c0_24 = arith.constant 0 : index
    %50 = vector.load %arg6[%49, %c0_23, %c0_24] : memref<8x8x128xf32, #tpu.memory_space<vmem>>, vector<1x8x128xf32>
    %51 = vector.shape_cast %50 : vector<1x8x128xf32> to vector<8x128xf32>
    %52 = vector.shape_cast %48 : vector<8x128xf32> to vector<1x8x128xf32>
    tpu.vector_store %arg6[%49, %c0_23, %c0_24], %52 {strides = array<i32>} : memref<8x8x128xf32, #tpu.memory_space<vmem>>, vector<1x8x128xf32>,
    %c1_i32 = arith.constant 1 : i32
    %53 = arith.truncf %48 : vector<8x128xf32> to vector<8x128xbf16>
    %cst_25 = arith.constant dense<0.000000e+00> : vector<8x384xf32>
    %54 = tpu.matmul %53, %12, %cst_25 {dimension_numbers = #tpu.dot_dimension_numbers<[1], [0], [0], [1], [0, 0, 1, 1], [], []>} : vector<8x128xbf16>, vector<128x384xbf16>, vector<8x384xf32> -> vector<8x384xf32>
    %55 = arith.index_cast %c1_i32 : i32 to index
    %c0_26 = arith.constant 0 : index
    %c0_27 = arith.constant 0 : index
    %56 = vector.load %arg8[%55, %c0_26, %c0_27] : memref<8x8x384xf32, #tpu.memory_space<vmem>>, vector<1x8x384xf32>
    %57 = vector.shape_cast %56 : vector<1x8x384xf32> to vector<8x384xf32>
    %58 = vector.extract_strided_slice %57 {offsets = [0, 0], sizes = [8, 128], strides = [1, 1]} : vector<8x384xf32> to vector<8x128xf32>
    %59 = vector.extract_strided_slice %54 {offsets = [0, 0], sizes = [8, 128], strides = [1, 1]} : vector<8x384xf32> to vector<8x128xf32>
    %60 = arith.addf %58, %59 : vector<8x128xf32>
    %61 = arith.negf %60 : vector<8x128xf32>
    %62 = math.exp %61 : vector<8x128xf32>
    %cst_28 = arith.constant 1.000000e+00 : f32
    %63 = vector.broadcast %cst_28 : f32 to vector<8x128xf32>
    %64 = arith.addf %63, %62 : vector<8x128xf32>
    %65 = arith.divf %63, %64 : vector<8x128xf32>
    %66 = vector.extract_strided_slice %57 {offsets = [0, 128], sizes = [8, 128], strides = [1, 1]} : vector<8x384xf32> to vector<8x128xf32>
    %67 = vector.extract_strided_slice %54 {offsets = [0, 128], sizes = [8, 128], strides = [1, 1]} : vector<8x384xf32> to vector<8x128xf32>
    %68 = arith.addf %66, %67 : vector<8x128xf32>
    %69 = arith.negf %68 : vector<8x128xf32>
    %70 = math.exp %69 : vector<8x128xf32>
    %cst_29 = arith.constant 1.000000e+00 : f32
    %71 = vector.broadcast %cst_29 : f32 to vector<8x128xf32>
    %72 = arith.addf %71, %70 : vector<8x128xf32>
    %73 = arith.divf %71, %72 : vector<8x128xf32>
    %74 = vector.extract_strided_slice %57 {offsets = [0, 256], sizes = [8, 128], strides = [1, 1]} : vector<8x384xf32> to vector<8x128xf32>
    %75 = vector.extract_strided_slice %54 {offsets = [0, 256], sizes = [8, 128], strides = [1, 1]} : vector<8x384xf32> to vector<8x128xf32>
    %76 = arith.addf %75, %15 : vector<8x128xf32>
    %77 = arith.mulf %65, %76 : vector<8x128xf32>
    %78 = arith.addf %74, %77 : vector<8x128xf32>
    %79 = math.tanh %78 : vector<8x128xf32>
    %cst_30 = arith.constant 1.000000e+00 : f32
    %80 = vector.broadcast %cst_30 : f32 to vector<8x128xf32>
    %81 = arith.subf %80, %73 : vector<8x128xf32>
    %82 = arith.mulf %81, %79 : vector<8x128xf32>
    %83 = arith.mulf %73, %48 : vector<8x128xf32>
    %84 = arith.addf %82, %83 : vector<8x128xf32>
    %85 = arith.index_cast %c1_i32 : i32 to index
    %c0_31 = arith.constant 0 : index
    %c0_32 = arith.constant 0 : index
    %86 = vector.load %arg6[%85, %c0_31, %c0_32] : memref<8x8x128xf32, #tpu.memory_space<vmem>>, vector<1x8x128xf32>
    %87 = vector.shape_cast %86 : vector<1x8x128xf32> to vector<8x128xf32>
    %88 = vector.shape_cast %84 : vector<8x128xf32> to vector<1x8x128xf32>
    tpu.vector_store %arg6[%85, %c0_31, %c0_32], %88 {strides = array<i32>} : memref<8x8x128xf32, #tpu.memory_space<vmem>>, vector<1x8x128xf32>,
    %c2_i32 = arith.constant 2 : i32
    %89 = arith.truncf %84 : vector<8x128xf32> to vector<8x128xbf16>
    %cst_33 = arith.constant dense<0.000000e+00> : vector<8x384xf32>
    %90 = tpu.matmul %89, %12, %cst_33 {dimension_numbers = #tpu.dot_dimension_numbers<[1], [0], [0], [1], [0, 0, 1, 1], [], []>} : vector<8x128xbf16>, vector<128x384xbf16>, vector<8x384xf32> -> vector<8x384xf32>
    %91 = arith.index_cast %c2_i32 : i32 to index
    %c0_34 = arith.constant 0 : index
    %c0_35 = arith.constant 0 : index
    %92 = vector.load %arg8[%91, %c0_34, %c0_35] : memref<8x8x384xf32, #tpu.memory_space<vmem>>, vector<1x8x384xf32>
    %93 = vector.shape_cast %92 : vector<1x8x384xf32> to vector<8x384xf32>
    %94 = vector.extract_strided_slice %93 {offsets = [0, 0], sizes = [8, 128], strides = [1, 1]} : vector<8x384xf32> to vector<8x128xf32>
    %95 = vector.extract_strided_slice %90 {offsets = [0, 0], sizes = [8, 128], strides = [1, 1]} : vector<8x384xf32> to vector<8x128xf32>
    %96 = arith.addf %94, %95 : vector<8x128xf32>
    %97 = arith.negf %96 : vector<8x128xf32>
    %98 = math.exp %97 : vector<8x128xf32>
    %cst_36 = arith.constant 1.000000e+00 : f32
    %99 = vector.broadcast %cst_36 : f32 to vector<8x128xf32>
    %100 = arith.addf %99, %98 : vector<8x128xf32>
    %101 = arith.divf %99, %100 : vector<8x128xf32>
    %102 = vector.extract_strided_slice %93 {offsets = [0, 128], sizes = [8, 128], strides = [1, 1]} : vector<8x384xf32> to vector<8x128xf32>
    %103 = vector.extract_strided_slice %90 {offsets = [0, 128], sizes = [8, 128], strides = [1, 1]} : vector<8x384xf32> to vector<8x128xf32>
    %104 = arith.addf %102, %103 : vector<8x128xf32>
    %105 = arith.negf %104 : vector<8x128xf32>
    %106 = math.exp %105 : vector<8x128xf32>
    %cst_37 = arith.constant 1.000000e+00 : f32
    %107 = vector.broadcast %cst_37 : f32 to vector<8x128xf32>
    %108 = arith.addf %107, %106 : vector<8x128xf32>
    %109 = arith.divf %107, %108 : vector<8x128xf32>
    %110 = vector.extract_strided_slice %93 {offsets = [0, 256], sizes = [8, 128], strides = [1, 1]} : vector<8x384xf32> to vector<8x128xf32>
    %111 = vector.extract_strided_slice %90 {offsets = [0, 256], sizes = [8, 128], strides = [1, 1]} : vector<8x384xf32> to vector<8x128xf32>
    %112 = arith.addf %111, %15 : vector<8x128xf32>
    %113 = arith.mulf %101, %112 : vector<8x128xf32>
    %114 = arith.addf %110, %113 : vector<8x128xf32>
    %115 = math.tanh %114 : vector<8x128xf32>
    %cst_38 = arith.constant 1.000000e+00 : f32
    %116 = vector.broadcast %cst_38 : f32 to vector<8x128xf32>
    %117 = arith.subf %116, %109 : vector<8x128xf32>
    %118 = arith.mulf %117, %115 : vector<8x128xf32>
    %119 = arith.mulf %109, %84 : vector<8x128xf32>
    %120 = arith.addf %118, %119 : vector<8x128xf32>
    %121 = arith.index_cast %c2_i32 : i32 to index
    %c0_39 = arith.constant 0 : index
    %c0_40 = arith.constant 0 : index
    %122 = vector.load %arg6[%121, %c0_39, %c0_40] : memref<8x8x128xf32, #tpu.memory_space<vmem>>, vector<1x8x128xf32>
    %123 = vector.shape_cast %122 : vector<1x8x128xf32> to vector<8x128xf32>
    %124 = vector.shape_cast %120 : vector<8x128xf32> to vector<1x8x128xf32>
    tpu.vector_store %arg6[%121, %c0_39, %c0_40], %124 {strides = array<i32>} : memref<8x8x128xf32, #tpu.memory_space<vmem>>, vector<1x8x128xf32>,
    %c3_i32 = arith.constant 3 : i32
    %125 = arith.truncf %120 : vector<8x128xf32> to vector<8x128xbf16>
    %cst_41 = arith.constant dense<0.000000e+00> : vector<8x384xf32>
    %126 = tpu.matmul %125, %12, %cst_41 {dimension_numbers = #tpu.dot_dimension_numbers<[1], [0], [0], [1], [0, 0, 1, 1], [], []>} : vector<8x128xbf16>, vector<128x384xbf16>, vector<8x384xf32> -> vector<8x384xf32>
    %127 = arith.index_cast %c3_i32 : i32 to index
    %c0_42 = arith.constant 0 : index
    %c0_43 = arith.constant 0 : index
    %128 = vector.load %arg8[%127, %c0_42, %c0_43] : memref<8x8x384xf32, #tpu.memory_space<vmem>>, vector<1x8x384xf32>
    %129 = vector.shape_cast %128 : vector<1x8x384xf32> to vector<8x384xf32>
    %130 = vector.extract_strided_slice %129 {offsets = [0, 0], sizes = [8, 128], strides = [1, 1]} : vector<8x384xf32> to vector<8x128xf32>
    %131 = vector.extract_strided_slice %126 {offsets = [0, 0], sizes = [8, 128], strides = [1, 1]} : vector<8x384xf32> to vector<8x128xf32>
    %132 = arith.addf %130, %131 : vector<8x128xf32>
    %133 = arith.negf %132 : vector<8x128xf32>
    %134 = math.exp %133 : vector<8x128xf32>
    %cst_44 = arith.constant 1.000000e+00 : f32
    %135 = vector.broadcast %cst_44 : f32 to vector<8x128xf32>
    %136 = arith.addf %135, %134 : vector<8x128xf32>
    %137 = arith.divf %135, %136 : vector<8x128xf32>
    %138 = vector.extract_strided_slice %129 {offsets = [0, 128], sizes = [8, 128], strides = [1, 1]} : vector<8x384xf32> to vector<8x128xf32>
    %139 = vector.extract_strided_slice %126 {offsets = [0, 128], sizes = [8, 128], strides = [1, 1]} : vector<8x384xf32> to vector<8x128xf32>
    %140 = arith.addf %138, %139 : vector<8x128xf32>
    %141 = arith.negf %140 : vector<8x128xf32>
    %142 = math.exp %141 : vector<8x128xf32>
    %cst_45 = arith.constant 1.000000e+00 : f32
    %143 = vector.broadcast %cst_45 : f32 to vector<8x128xf32>
    %144 = arith.addf %143, %142 : vector<8x128xf32>
    %145 = arith.divf %143, %144 : vector<8x128xf32>
    %146 = vector.extract_strided_slice %129 {offsets = [0, 256], sizes = [8, 128], strides = [1, 1]} : vector<8x384xf32> to vector<8x128xf32>
    %147 = vector.extract_strided_slice %126 {offsets = [0, 256], sizes = [8, 128], strides = [1, 1]} : vector<8x384xf32> to vector<8x128xf32>
    %148 = arith.addf %147, %15 : vector<8x128xf32>
    %149 = arith.mulf %137, %148 : vector<8x128xf32>
    %150 = arith.addf %146, %149 : vector<8x128xf32>
    %151 = math.tanh %150 : vector<8x128xf32>
    %cst_46 = arith.constant 1.000000e+00 : f32
    %152 = vector.broadcast %cst_46 : f32 to vector<8x128xf32>
    %153 = arith.subf %152, %145 : vector<8x128xf32>
    %154 = arith.mulf %153, %151 : vector<8x128xf32>
    %155 = arith.mulf %145, %120 : vector<8x128xf32>
    %156 = arith.addf %154, %155 : vector<8x128xf32>
    %157 = arith.index_cast %c3_i32 : i32 to index
    %c0_47 = arith.constant 0 : index
    %c0_48 = arith.constant 0 : index
    %158 = vector.load %arg6[%157, %c0_47, %c0_48] : memref<8x8x128xf32, #tpu.memory_space<vmem>>, vector<1x8x128xf32>
    %159 = vector.shape_cast %158 : vector<1x8x128xf32> to vector<8x128xf32>
    %160 = vector.shape_cast %156 : vector<8x128xf32> to vector<1x8x128xf32>
    tpu.vector_store %arg6[%157, %c0_47, %c0_48], %160 {strides = array<i32>} : memref<8x8x128xf32, #tpu.memory_space<vmem>>, vector<1x8x128xf32>,
    %c4_i32 = arith.constant 4 : i32
    %161 = arith.truncf %156 : vector<8x128xf32> to vector<8x128xbf16>
    %cst_49 = arith.constant dense<0.000000e+00> : vector<8x384xf32>
    %162 = tpu.matmul %161, %12, %cst_49 {dimension_numbers = #tpu.dot_dimension_numbers<[1], [0], [0], [1], [0, 0, 1, 1], [], []>} : vector<8x128xbf16>, vector<128x384xbf16>, vector<8x384xf32> -> vector<8x384xf32>
    %163 = arith.index_cast %c4_i32 : i32 to index
    %c0_50 = arith.constant 0 : index
    %c0_51 = arith.constant 0 : index
    %164 = vector.load %arg8[%163, %c0_50, %c0_51] : memref<8x8x384xf32, #tpu.memory_space<vmem>>, vector<1x8x384xf32>
    %165 = vector.shape_cast %164 : vector<1x8x384xf32> to vector<8x384xf32>
    %166 = vector.extract_strided_slice %165 {offsets = [0, 0], sizes = [8, 128], strides = [1, 1]} : vector<8x384xf32> to vector<8x128xf32>
    %167 = vector.extract_strided_slice %162 {offsets = [0, 0], sizes = [8, 128], strides = [1, 1]} : vector<8x384xf32> to vector<8x128xf32>
    %168 = arith.addf %166, %167 : vector<8x128xf32>
    %169 = arith.negf %168 : vector<8x128xf32>
    %170 = math.exp %169 : vector<8x128xf32>
    %cst_52 = arith.constant 1.000000e+00 : f32
    %171 = vector.broadcast %cst_52 : f32 to vector<8x128xf32>
    %172 = arith.addf %171, %170 : vector<8x128xf32>
    %173 = arith.divf %171, %172 : vector<8x128xf32>
    %174 = vector.extract_strided_slice %165 {offsets = [0, 128], sizes = [8, 128], strides = [1, 1]} : vector<8x384xf32> to vector<8x128xf32>
    %175 = vector.extract_strided_slice %162 {offsets = [0, 128], sizes = [8, 128], strides = [1, 1]} : vector<8x384xf32> to vector<8x128xf32>
    %176 = arith.addf %174, %175 : vector<8x128xf32>
    %177 = arith.negf %176 : vector<8x128xf32>
    %178 = math.exp %177 : vector<8x128xf32>
    %cst_53 = arith.constant 1.000000e+00 : f32
    %179 = vector.broadcast %cst_53 : f32 to vector<8x128xf32>
    %180 = arith.addf %179, %178 : vector<8x128xf32>
    %181 = arith.divf %179, %180 : vector<8x128xf32>
    %182 = vector.extract_strided_slice %165 {offsets = [0, 256], sizes = [8, 128], strides = [1, 1]} : vector<8x384xf32> to vector<8x128xf32>
    %183 = vector.extract_strided_slice %162 {offsets = [0, 256], sizes = [8, 128], strides = [1, 1]} : vector<8x384xf32> to vector<8x128xf32>
    %184 = arith.addf %183, %15 : vector<8x128xf32>
    %185 = arith.mulf %173, %184 : vector<8x128xf32>
    %186 = arith.addf %182, %185 : vector<8x128xf32>
    %187 = math.tanh %186 : vector<8x128xf32>
    %cst_54 = arith.constant 1.000000e+00 : f32
    %188 = vector.broadcast %cst_54 : f32 to vector<8x128xf32>
    %189 = arith.subf %188, %181 : vector<8x128xf32>
    %190 = arith.mulf %189, %187 : vector<8x128xf32>
    %191 = arith.mulf %181, %156 : vector<8x128xf32>
    %192 = arith.addf %190, %191 : vector<8x128xf32>
    %193 = arith.index_cast %c4_i32 : i32 to index
    %c0_55 = arith.constant 0 : index
    %c0_56 = arith.constant 0 : index
    %194 = vector.load %arg6[%193, %c0_55, %c0_56] : memref<8x8x128xf32, #tpu.memory_space<vmem>>, vector<1x8x128xf32>
    %195 = vector.shape_cast %194 : vector<1x8x128xf32> to vector<8x128xf32>
    %196 = vector.shape_cast %192 : vector<8x128xf32> to vector<1x8x128xf32>
    tpu.vector_store %arg6[%193, %c0_55, %c0_56], %196 {strides = array<i32>} : memref<8x8x128xf32, #tpu.memory_space<vmem>>, vector<1x8x128xf32>,
    %c5_i32 = arith.constant 5 : i32
    %197 = arith.truncf %192 : vector<8x128xf32> to vector<8x128xbf16>
    %cst_57 = arith.constant dense<0.000000e+00> : vector<8x384xf32>
    %198 = tpu.matmul %197, %12, %cst_57 {dimension_numbers = #tpu.dot_dimension_numbers<[1], [0], [0], [1], [0, 0, 1, 1], [], []>} : vector<8x128xbf16>, vector<128x384xbf16>, vector<8x384xf32> -> vector<8x384xf32>
    %199 = arith.index_cast %c5_i32 : i32 to index
    %c0_58 = arith.constant 0 : index
    %c0_59 = arith.constant 0 : index
    %200 = vector.load %arg8[%199, %c0_58, %c0_59] : memref<8x8x384xf32, #tpu.memory_space<vmem>>, vector<1x8x384xf32>
    %201 = vector.shape_cast %200 : vector<1x8x384xf32> to vector<8x384xf32>
    %202 = vector.extract_strided_slice %201 {offsets = [0, 0], sizes = [8, 128], strides = [1, 1]} : vector<8x384xf32> to vector<8x128xf32>
    %203 = vector.extract_strided_slice %198 {offsets = [0, 0], sizes = [8, 128], strides = [1, 1]} : vector<8x384xf32> to vector<8x128xf32>
    %204 = arith.addf %202, %203 : vector<8x128xf32>
    %205 = arith.negf %204 : vector<8x128xf32>
    %206 = math.exp %205 : vector<8x128xf32>
    %cst_60 = arith.constant 1.000000e+00 : f32
    %207 = vector.broadcast %cst_60 : f32 to vector<8x128xf32>
    %208 = arith.addf %207, %206 : vector<8x128xf32>
    %209 = arith.divf %207, %208 : vector<8x128xf32>
    %210 = vector.extract_strided_slice %201 {offsets = [0, 128], sizes = [8, 128], strides = [1, 1]} : vector<8x384xf32> to vector<8x128xf32>
    %211 = vector.extract_strided_slice %198 {offsets = [0, 128], sizes = [8, 128], strides = [1, 1]} : vector<8x384xf32> to vector<8x128xf32>
    %212 = arith.addf %210, %211 : vector<8x128xf32>
    %213 = arith.negf %212 : vector<8x128xf32>
    %214 = math.exp %213 : vector<8x128xf32>
    %cst_61 = arith.constant 1.000000e+00 : f32
    %215 = vector.broadcast %cst_61 : f32 to vector<8x128xf32>
    %216 = arith.addf %215, %214 : vector<8x128xf32>
    %217 = arith.divf %215, %216 : vector<8x128xf32>
    %218 = vector.extract_strided_slice %201 {offsets = [0, 256], sizes = [8, 128], strides = [1, 1]} : vector<8x384xf32> to vector<8x128xf32>
    %219 = vector.extract_strided_slice %198 {offsets = [0, 256], sizes = [8, 128], strides = [1, 1]} : vector<8x384xf32> to vector<8x128xf32>
    %220 = arith.addf %219, %15 : vector<8x128xf32>
    %221 = arith.mulf %209, %220 : vector<8x128xf32>
    %222 = arith.addf %218, %221 : vector<8x128xf32>
    %223 = math.tanh %222 : vector<8x128xf32>
    %cst_62 = arith.constant 1.000000e+00 : f32
    %224 = vector.broadcast %cst_62 : f32 to vector<8x128xf32>
    %225 = arith.subf %224, %217 : vector<8x128xf32>
    %226 = arith.mulf %225, %223 : vector<8x128xf32>
    %227 = arith.mulf %217, %192 : vector<8x128xf32>
    %228 = arith.addf %226, %227 : vector<8x128xf32>
    %229 = arith.index_cast %c5_i32 : i32 to index
    %c0_63 = arith.constant 0 : index
    %c0_64 = arith.constant 0 : index
    %230 = vector.load %arg6[%229, %c0_63, %c0_64] : memref<8x8x128xf32, #tpu.memory_space<vmem>>, vector<1x8x128xf32>
    %231 = vector.shape_cast %230 : vector<1x8x128xf32> to vector<8x128xf32>
    %232 = vector.shape_cast %228 : vector<8x128xf32> to vector<1x8x128xf32>
    tpu.vector_store %arg6[%229, %c0_63, %c0_64], %232 {strides = array<i32>} : memref<8x8x128xf32, #tpu.memory_space<vmem>>, vector<1x8x128xf32>,
    %c6_i32 = arith.constant 6 : i32
    %233 = arith.truncf %228 : vector<8x128xf32> to vector<8x128xbf16>
    %cst_65 = arith.constant dense<0.000000e+00> : vector<8x384xf32>
    %234 = tpu.matmul %233, %12, %cst_65 {dimension_numbers = #tpu.dot_dimension_numbers<[1], [0], [0], [1], [0, 0, 1, 1], [], []>} : vector<8x128xbf16>, vector<128x384xbf16>, vector<8x384xf32> -> vector<8x384xf32>
    %235 = arith.index_cast %c6_i32 : i32 to index
    %c0_66 = arith.constant 0 : index
    %c0_67 = arith.constant 0 : index
    %236 = vector.load %arg8[%235, %c0_66, %c0_67] : memref<8x8x384xf32, #tpu.memory_space<vmem>>, vector<1x8x384xf32>
    %237 = vector.shape_cast %236 : vector<1x8x384xf32> to vector<8x384xf32>
    %238 = vector.extract_strided_slice %237 {offsets = [0, 0], sizes = [8, 128], strides = [1, 1]} : vector<8x384xf32> to vector<8x128xf32>
    %239 = vector.extract_strided_slice %234 {offsets = [0, 0], sizes = [8, 128], strides = [1, 1]} : vector<8x384xf32> to vector<8x128xf32>
    %240 = arith.addf %238, %239 : vector<8x128xf32>
    %241 = arith.negf %240 : vector<8x128xf32>
    %242 = math.exp %241 : vector<8x128xf32>
    %cst_68 = arith.constant 1.000000e+00 : f32
    %243 = vector.broadcast %cst_68 : f32 to vector<8x128xf32>
    %244 = arith.addf %243, %242 : vector<8x128xf32>
    %245 = arith.divf %243, %244 : vector<8x128xf32>
    %246 = vector.extract_strided_slice %237 {offsets = [0, 128], sizes = [8, 128], strides = [1, 1]} : vector<8x384xf32> to vector<8x128xf32>
    %247 = vector.extract_strided_slice %234 {offsets = [0, 128], sizes = [8, 128], strides = [1, 1]} : vector<8x384xf32> to vector<8x128xf32>
    %248 = arith.addf %246, %247 : vector<8x128xf32>
    %249 = arith.negf %248 : vector<8x128xf32>
    %250 = math.exp %249 : vector<8x128xf32>
    %cst_69 = arith.constant 1.000000e+00 : f32
    %251 = vector.broadcast %cst_69 : f32 to vector<8x128xf32>
    %252 = arith.addf %251, %250 : vector<8x128xf32>
    %253 = arith.divf %251, %252 : vector<8x128xf32>
    %254 = vector.extract_strided_slice %237 {offsets = [0, 256], sizes = [8, 128], strides = [1, 1]} : vector<8x384xf32> to vector<8x128xf32>
    %255 = vector.extract_strided_slice %234 {offsets = [0, 256], sizes = [8, 128], strides = [1, 1]} : vector<8x384xf32> to vector<8x128xf32>
    %256 = arith.addf %255, %15 : vector<8x128xf32>
    %257 = arith.mulf %245, %256 : vector<8x128xf32>
    %258 = arith.addf %254, %257 : vector<8x128xf32>
    %259 = math.tanh %258 : vector<8x128xf32>
    %cst_70 = arith.constant 1.000000e+00 : f32
    %260 = vector.broadcast %cst_70 : f32 to vector<8x128xf32>
    %261 = arith.subf %260, %253 : vector<8x128xf32>
    %262 = arith.mulf %261, %259 : vector<8x128xf32>
    %263 = arith.mulf %253, %228 : vector<8x128xf32>
    %264 = arith.addf %262, %263 : vector<8x128xf32>
    %265 = arith.index_cast %c6_i32 : i32 to index
    %c0_71 = arith.constant 0 : index
    %c0_72 = arith.constant 0 : index
    %266 = vector.load %arg6[%265, %c0_71, %c0_72] : memref<8x8x128xf32, #tpu.memory_space<vmem>>, vector<1x8x128xf32>
    %267 = vector.shape_cast %266 : vector<1x8x128xf32> to vector<8x128xf32>
    %268 = vector.shape_cast %264 : vector<8x128xf32> to vector<1x8x128xf32>
    tpu.vector_store %arg6[%265, %c0_71, %c0_72], %268 {strides = array<i32>} : memref<8x8x128xf32, #tpu.memory_space<vmem>>, vector<1x8x128xf32>,
    %c7_i32 = arith.constant 7 : i32
    %269 = arith.truncf %264 : vector<8x128xf32> to vector<8x128xbf16>
    %cst_73 = arith.constant dense<0.000000e+00> : vector<8x384xf32>
    %270 = tpu.matmul %269, %12, %cst_73 {dimension_numbers = #tpu.dot_dimension_numbers<[1], [0], [0], [1], [0, 0, 1, 1], [], []>} : vector<8x128xbf16>, vector<128x384xbf16>, vector<8x384xf32> -> vector<8x384xf32>
    %271 = arith.index_cast %c7_i32 : i32 to index
    %c0_74 = arith.constant 0 : index
    %c0_75 = arith.constant 0 : index
    %272 = vector.load %arg8[%271, %c0_74, %c0_75] : memref<8x8x384xf32, #tpu.memory_space<vmem>>, vector<1x8x384xf32>
    %273 = vector.shape_cast %272 : vector<1x8x384xf32> to vector<8x384xf32>
    %274 = vector.extract_strided_slice %273 {offsets = [0, 0], sizes = [8, 128], strides = [1, 1]} : vector<8x384xf32> to vector<8x128xf32>
    %275 = vector.extract_strided_slice %270 {offsets = [0, 0], sizes = [8, 128], strides = [1, 1]} : vector<8x384xf32> to vector<8x128xf32>
    %276 = arith.addf %274, %275 : vector<8x128xf32>
    %277 = arith.negf %276 : vector<8x128xf32>
    %278 = math.exp %277 : vector<8x128xf32>
    %cst_76 = arith.constant 1.000000e+00 : f32
    %279 = vector.broadcast %cst_76 : f32 to vector<8x128xf32>
    %280 = arith.addf %279, %278 : vector<8x128xf32>
    %281 = arith.divf %279, %280 : vector<8x128xf32>
    %282 = vector.extract_strided_slice %273 {offsets = [0, 128], sizes = [8, 128], strides = [1, 1]} : vector<8x384xf32> to vector<8x128xf32>
    %283 = vector.extract_strided_slice %270 {offsets = [0, 128], sizes = [8, 128], strides = [1, 1]} : vector<8x384xf32> to vector<8x128xf32>
    %284 = arith.addf %282, %283 : vector<8x128xf32>
    %285 = arith.negf %284 : vector<8x128xf32>
    %286 = math.exp %285 : vector<8x128xf32>
    %cst_77 = arith.constant 1.000000e+00 : f32
    %287 = vector.broadcast %cst_77 : f32 to vector<8x128xf32>
    %288 = arith.addf %287, %286 : vector<8x128xf32>
    %289 = arith.divf %287, %288 : vector<8x128xf32>
    %290 = vector.extract_strided_slice %273 {offsets = [0, 256], sizes = [8, 128], strides = [1, 1]} : vector<8x384xf32> to vector<8x128xf32>
    %291 = vector.extract_strided_slice %270 {offsets = [0, 256], sizes = [8, 128], strides = [1, 1]} : vector<8x384xf32> to vector<8x128xf32>
    %292 = arith.addf %291, %15 : vector<8x128xf32>
    %293 = arith.mulf %281, %292 : vector<8x128xf32>
    %294 = arith.addf %290, %293 : vector<8x128xf32>
    %295 = math.tanh %294 : vector<8x128xf32>
    %cst_78 = arith.constant 1.000000e+00 : f32
    %296 = vector.broadcast %cst_78 : f32 to vector<8x128xf32>
    %297 = arith.subf %296, %289 : vector<8x128xf32>
    %298 = arith.mulf %297, %295 : vector<8x128xf32>
    %299 = arith.mulf %289, %264 : vector<8x128xf32>
    %300 = arith.addf %298, %299 : vector<8x128xf32>
    %301 = arith.index_cast %c7_i32 : i32 to index
    %c0_79 = arith.constant 0 : index
    %c0_80 = arith.constant 0 : index
    %302 = vector.load %arg6[%301, %c0_79, %c0_80] : memref<8x8x128xf32, #tpu.memory_space<vmem>>, vector<1x8x128xf32>
    %303 = vector.shape_cast %302 : vector<1x8x128xf32> to vector<8x128xf32>
    %304 = vector.shape_cast %300 : vector<8x128xf32> to vector<1x8x128xf32>
    tpu.vector_store %arg6[%301, %c0_79, %c0_80], %304 {strides = array<i32>} : memref<8x8x128xf32, #tpu.memory_space<vmem>>, vector<1x8x128xf32>,
    %c8_i32 = arith.constant 8 : i32
    %c0_81 = arith.constant 0 : index
    %c0_82 = arith.constant 0 : index
    %305 = vector.load %arg7[%c0_81, %c0_82] : memref<8x128xf32, #tpu.memory_space<vmem>>, vector<8x128xf32>
    tpu.vector_store %arg7[%c0_81, %c0_82], %300 {strides = array<i32>} : memref<8x128xf32, #tpu.memory_space<vmem>>, vector<8x128xf32>,
    return
  }
  func.func @transform_0(%arg0: i32) -> (i32, i32, i32) {
    %c0_i32 = arith.constant 0 : i32
    %c0_i32_0 = arith.constant 0 : i32
    %c0_i32_1 = arith.constant 0 : i32
    return %arg0, %c0_i32, %c0_i32_0 : i32, i32, i32
  }
  func.func @transform_1(%arg0: i32) -> (i32, i32) {
    %c0_i32 = arith.constant 0 : i32
    %c0_i32_0 = arith.constant 0 : i32
    %c0_i32_1 = arith.constant 0 : i32
    return %c0_i32, %c0_i32_0 : i32, i32
  }
  func.func @transform_2(%arg0: i32) -> (i32, i32) {
    %c0_i32 = arith.constant 0 : i32
    %c0_i32_0 = arith.constant 0 : i32
    %c0_i32_1 = arith.constant 0 : i32
    return %c0_i32, %c0_i32_0 : i32, i32
  }
  func.func @transform_3(%arg0: i32) -> (i32, i32) {
    %c0_i32 = arith.constant 0 : i32
    %c0_i32_0 = arith.constant 0 : i32
    %c0_i32_1 = arith.constant 0 : i32
    return %c0_i32, %c0_i32_0 : i32, i32
  }
  func.func @transform_4(%arg0: i32) -> (i32, i32) {
    %c0_i32 = arith.constant 0 : i32
    %c0_i32_0 = arith.constant 0 : i32
    %c0_i32_1 = arith.constant 0 : i32
    return %c0_i32, %c0_i32_0 : i32, i32
  }
  func.func @transform_5(%arg0: i32) -> (i32, i32, i32) {
    %c0_i32 = arith.constant 0 : i32
    %c0_i32_0 = arith.constant 0 : i32
    %c0_i32_1 = arith.constant 0 : i32
    return %arg0, %c0_i32, %c0_i32_0 : i32, i32, i32
  }
  func.func @transform_6(%arg0: i32) -> (i32, i32) {
    %c0_i32 = arith.constant 0 : i32
    %c0_i32_0 = arith.constant 0 : i32
    %c0_i32_1 = arith.constant 0 : i32
    return %c0_i32, %c0_i32_0 : i32, i32
  }
}

</mosaic_0001>

<bundles_post_ra>
// kernel: encoder_forward.1
= control target key start
LH: loop header
LB: loop body
LE: loop exit
PB: predicated region body
PF: predicated region fallthrough
CT: control target
= control target key end

     0   :  { %v2701_v1 = vmov 0   ;;  %v2703_v35 = vmov 0.0   ;;  %vm1973_vm0 = vmmov 0   ;;  %v1974_v53 = vmov 0.0|0.0   ;;  %s2694_s1 = inlined_call_operand.vmem [shape: bf16[128,384], index: 1, kind: input, shape index: {}]   ;;  %s2695_s0 = inlined_call_operand.vmem [shape: bf16[8,8,128], index: 0, kind: input, shape index: {}]   ;;  %s2696_s2 = inlined_call_operand.vmem [shape: bf16[128,384], index: 2, kind: input, shape index: {}]   ;;  %s2697_s3 = inlined_call_operand.vmem [shape: f32[1,384], index: 3, kind: input, shape index: {}]   ;;  %s2698_s4 = inlined_call_operand.vmem [shape: f32[1,128], index: 4, kind: input, shape index: {}]   ;;  %s2699_s5 = inlined_call_operand.vmem [shape: f32[8,8,128], index: 5, kind: output, shape index: {0}]   ;;  %s2700_s6 = inlined_call_operand.vmem [shape: f32[8,128], index: 6, kind: output, shape index: {1}]  }
   0x1   :  { %v1801_v0 = vld [vmem:[%s2694_s1 + $0xac] ss:$12 sps:$4 sm:$0xff]   ;;  %264 = vmatprep.mubr.bf16.mxu0 %v2701_v1  ;;  %v1803_v2 = vld [vmem:[%s2694_s1 + $0xa8] ss:$12 sps:$4 sm:$0xff]   ;;  %v1806_v4 = vld [vmem:[%s2694_s1 + $0x90] ss:$12 sps:$4 sm:$0xff]   ;;  %v65_v55 = vlaneseq }
   0x2   :  { %232 = vmatprep.subr.bf16.mxu0 %v1801_v0  ;;  %v1804_v3 = vld [vmem:[%s2694_s1 + $0x94] ss:$12 sps:$4 sm:$0xff]   ;;  %v1807_v5 = vld [vmem:[%s2694_s1 + $0x7c] ss:$12 sps:$4 sm:$0xff]   ;;  %v1809_v6 = vld [vmem:[%s2694_s1 + $0x78] ss:$12 sps:$4 sm:$0xff]  }
   0x3   :  { %233 = vmatpush1.bf16.msra.mxu0 %v1803_v2  ;;  %v1810_v7 = vld [vmem:[%s2694_s1 + $0x64] ss:$12 sps:$4 sm:$0xff]   ;;  %v1812_v9 = vld [vmem:[%s2694_s1 + $0x60] ss:$12 sps:$4 sm:$0xff]   ;;  %v1815_v13 = vld [vmem:[%s2694_s1 + $0x48] ss:$12 sps:$4 sm:$0xff]  }
   0x4   :  { %234 = vmatprep.subr.bf16.mxu0 %v1804_v3  ;;  %v1822_v8 = vld [vmem:[%s2694_s1 + $0xb0] ss:$12 sps:$4 sm:$0xff]   ;;  %v1813_v10 = vld [vmem:[%s2694_s1 + $0x4c] ss:$12 sps:$4 sm:$0xff]   ;;  %v1827_v12 = vld [vmem:[%s2695_s0] sm:$0xff]   ;;  %v66_v56 = vshrl.u32 %v65_v55, 7 }
   0x5   :  { %1614 = vmatprep.subr.bf16.mxu1 %v1822_v8  ;;  %v1826_v11 = vld [vmem:[%s2694_s1 + $0x98] ss:$12 sps:$4 sm:$0xff]   ;;  %v1831_v14 = vld [vmem:[%s2694_s1 + $0x80] ss:$12 sps:$4 sm:$0xff]   ;;  %1630 = vmatprep.mubr.bf16.mxu1 %v1827_v12  ;;  %v1835_v16 = vld [vmem:[%s2694_s1 + $0x68] ss:$12 sps:$4 sm:$0xff]  }
   0x6   :  { %1615 = vmatpush3.bf16.msra.mxu1 %v1822_v8  ;;  %v1816_v15 = vld [vmem:[%s2694_s1 + $0x34] ss:$12 sps:$4 sm:$0xff]   ;;  %v1818_v17 = vld [vmem:[%s2694_s1 + $0x30] ss:$12 sps:$4 sm:$0xff]   ;;  %v1821_v20 = vld [vmem:[%s2694_s1 + $0x18] ss:$12 sps:$4 sm:$0xff]  }
   0x7   :  { %235 = vmatpush1.bf16.msra.mxu0 %v1806_v4  ;;  %1616 = vmatprep.subr.bf16.mxu1 %v1826_v11  ;;  %v1819_v18 = vld [vmem:[%s2694_s1 + $0x1c] ss:$12 sps:$4 sm:$0xff]   ;;  %v1823_v21 = vld [vmem:[%s2694_s1 + $0x4] ss:$12 sps:$4 sm:$0xff]   ;;  %v1825_v23 = vld [vmem:[%s2694_s1] ss:$12 sps:$4 sm:$0xff]  }
   0x8   :  { %236 = vmatprep.subr.bf16.mxu0 %v1807_v5  ;;  %v1840_v19 = vld [vmem:[%s2694_s1 + $0x50] ss:$12 sps:$4 sm:$0xff]   ;;  %v1844_v22 = vld [vmem:[%s2694_s1 + $0x38] ss:$12 sps:$4 sm:$0xff]   ;;  %v1849_v25 = vld [vmem:[%s2694_s1 + $0x20] ss:$12 sps:$4 sm:$0xff]  }
   0x9   :  { %v2083_v24 = vld [vmem:[%s2696_s2 + $0xac] ss:$12 sps:$4 sm:$0xff]   ;;  %v2091_v26 = vld [vmem:[%s2696_s2 + $0xa8] ss:$12 sps:$4 sm:$0xff]   ;;  %v2106_v29 = vld [vmem:[%s2696_s2 + $0x90] ss:$12 sps:$4 sm:$0xff]  }
   0xa   :  { %1617 = vmatpush3.bf16.msra.mxu1 %v1826_v11  ;;  %v2097_v27 = vld [vmem:[%s2696_s2 + $0x94] ss:$12 sps:$4 sm:$0xff]   ;;  %v2113_v30 = vld [vmem:[%s2696_s2 + $0x7c] ss:$12 sps:$4 sm:$0xff]   ;;  %v2122_v32 = vld [vmem:[%s2696_s2 + $0x78] ss:$12 sps:$4 sm:$0xff]  }
   0xb   :  { %237 = vmatpush1.bf16.msra.mxu0 %v1809_v6  ;;  %1618 = vmatprep.subr.bf16.mxu1 %v1831_v14  ;;  %v1853_v28 = vld [vmem:[%s2694_s1 + $0x8] ss:$12 sps:$4 sm:$0xff]   ;;  %v2128_v33 = vld [vmem:[%s2696_s2 + $0x64] ss:$12 sps:$4 sm:$0xff]   ;;  %v2140_v36 = vld [vmem:[%s2696_s2 + $0x60] ss:$12 sps:$4 sm:$0xff]  }
   0xc   :  { %238 = vmatprep.subr.bf16.mxu0 %v1810_v7  ;;  %v1836_v31 = vld [vmem:[%s2695_s0 + $0x8] sm:$0xff]   ;;  %v2133_v34 = vld [vmem:[%s2696_s2 + $0xb0] ss:$12 sps:$4 sm:$0xff]   ;;  %v2156_v39 = vld [vmem:[%s2696_s2 + $0x98] ss:$12 sps:$4 sm:$0xff]   ;;  %v67_v57 = vsub.s32 0, %v66_v56 }
   0xd   :  { %v1845_v37 = vld [vmem:[%s2695_s0 + $0x10] sm:$0xff]   ;;  %v2150_v38 = vld [vmem:[%s2696_s2 + $0x4c] ss:$12 sps:$4 sm:$0xff]   ;;  %v2192_v45 = vld [vmem:[%s2696_s2 + $0x1c] ss:$12 sps:$4 sm:$0xff]   ;;  %v71_v60 = vsub.s32 1, %v66_v56 }
   0xe   :  { %1619 = vmatpush3.bf16.msra.mxu1 %v1831_v14  ;;  %v2163_v40 = vld [vmem:[%s2696_s2 + $0x48] ss:$12 sps:$4 sm:$0xff]   ;;  %v2175_v42 = vld [vmem:[%s2696_s2 + $0x80] ss:$12 sps:$4 sm:$0xff]   ;;  %v1854_v43 = vld [vmem:[%s2695_s0 + $0x18] sm:$0xff]   ;;  %v75_v63 = vsub.s32 2, %v66_v56 }
   0xf   :  { %239 = vmatpush1.bf16.msra.mxu0 %v1812_v9  ;;  %1620 = vmatprep.subr.bf16.mxu1 %v1835_v16  ;;  %v2169_v41 = vld [vmem:[%s2696_s2 + $0x34] ss:$12 sps:$4 sm:$0xff]   ;;  %v2185_v44 = vld [vmem:[%s2696_s2 + $0x30] ss:$12 sps:$4 sm:$0xff]   ;;  %v2207_v47 = vld [vmem:[%s2696_s2 + $0x18] ss:$12 sps:$4 sm:$0xff]  }
  0x10   :  { %240 = vmatprep.subr.bf16.mxu0 %v1813_v10  ;;  %v2198_v46 = vld [vmem:[%s2696_s2 + $0x68] ss:$12 sps:$4 sm:$0xff]   ;;  %v2213_v48 = vld [vmem:[%s2696_s2 + $0x4] ss:$12 sps:$4 sm:$0xff]   ;;  %v2226_v50 = vld [vmem:[%s2696_s2] ss:$12 sps:$4 sm:$0xff]  }
  0x11   :  { %v2219_v49 = vld [vmem:[%s2696_s2 + $0x50] ss:$12 sps:$4 sm:$0xff]   ;;  %v2234_v51 = vld [vmem:[%s2696_s2 + $0x38] ss:$12 sps:$4 sm:$0xff]   ;;  %v2243_v52 = vld [vmem:[%s2696_s2 + $0x20] ss:$12 sps:$4 sm:$0xff]  }
  0x12   :  { %1621 = vmatpush3.bf16.msra.mxu1 %v1835_v16  ;;  %v2253_v54 = vld [vmem:[%s2696_s2 + $0x8] ss:$12 sps:$4 sm:$0xff]   ;;  %v63_v58 = vld [vmem:[%s2697_s3] sm:$0x7] }
  0x13   :  { %241 = vmatpush1.bf16.msra.mxu0 %v1815_v13  ;;  %1622 = vmatprep.subr.bf16.mxu1 %v1840_v19  ;;  %v68_v62 = vrot.slane %v63_v58, %v67_v57  ;;  %v72_v2 = vrot.slane %v63_v58, %v71_v60  ;;  %v2297_v6 = vrot.slane %v63_v58, %v75_v63 }
  0x14   :  { %242 = vmatprep.subr.bf16.mxu0 %v1816_v15 }
  0x16   :  { %1623 = vmatpush3.bf16.msra.mxu1 %v1840_v19 }
  0x17   :  { %243 = vmatpush1.bf16.msra.mxu0 %v1818_v17  ;;  %1624 = vmatprep.subr.bf16.mxu1 %v1844_v22 }
  0x18   :  { %244 = vmatprep.subr.bf16.mxu0 %v1819_v18 }
  0x1a   :  { %1625 = vmatpush3.bf16.msra.mxu1 %v1844_v22 }
  0x1b   :  { %245 = vmatpush1.bf16.msra.mxu0 %v1821_v20  ;;  %1626 = vmatprep.subr.bf16.mxu1 %v1849_v25 }
  0x1c   :  { %246 = vmatprep.subr.bf16.mxu0 %v1823_v21 }
  0x1e   :  { %1627 = vmatpush3.bf16.msra.mxu1 %v1849_v25 }
  0x1f   :  { %247 = vmatpush1.bf16.msra.mxu0 %v1825_v23  ;;  %1628 = vmatprep.subr.bf16.mxu1 %v1853_v28 }
  0x20   :  { %568 = vmatprep.subr.bf16.mxu0 %v2083_v24 }
  0x22   :  { %265 = vmatmul.mubr.bf16.vlgmr.msra.gmra.mxu0 %v1827_v12  ;;  %1629 = vmatpush3.bf16.msra.mxu1 %v1853_v28 }
  0x23   :  { %569 = vmatpush1.bf16.msra.mxu0 %v2091_v26  ;;  %274 = vmatprep.mubr.bf16.mxu0 %v2701_v1 }
  0x24   :  { %570 = vmatprep.subr.bf16.mxu0 %v2097_v27  ;;  %1638 = vmatprep.subr.bf16.mxu1 %v2703_v35 }
  0x25   :  { %1631 = vmatmul.mubr.bf16.vlgmr.msra.gmra.mxu1 %v1836_v31 }
  0x26   :  { %1639 = vmatpush3.bf16.msra.mxu1 %v2133_v34  ;;  %1634 = vmatprep.mubr.bf16.mxu1 %v1845_v37 }
  0x27   :  { %571 = vmatpush1.bf16.msra.mxu0 %v2106_v29  ;;  %1640 = vmatprep.subr.bf16.mxu1 %v2703_v35 }
  0x28   :  { %572 = vmatprep.subr.bf16.mxu0 %v2113_v30 }
  0x2a   :  { %275 = vmatmul.mubr.bf16.gmra.mxu0 %v1836_v31  ;;  %1641 = vmatpush3.bf16.msra.mxu1 %v2156_v39 }
  0x2b   :  { %573 = vmatpush1.bf16.msra.mxu0 %v2122_v32  ;;  %284 = vmatprep.mubr.bf16.mxu0 %v2701_v1 }
  0x2c   :  { %574 = vmatprep.subr.bf16.mxu0 %v2128_v33  ;;  %1642 = vmatprep.subr.bf16.mxu1 %v2703_v35 }
  0x2d   :  { %1635 = vmatmul.mubr.bf16.gmra.mxu1 %v1854_v43 }
  0x2e   :  { %1643 = vmatpush3.bf16.msra.mxu1 %v2175_v42  ;;  %1654 = vmatprep.mubr.msk.bf16.mxu1 %vm1973_vm0, %v2703_v35 }
  0x2f   :  { %575 = vmatpush1.bf16.msra.mxu0 %v2140_v36  ;;  %1644 = vmatprep.subr.bf16.mxu1 %v2703_v35 }
  0x30   :  { %576 = vmatprep.subr.bf16.mxu0 %v2150_v38 }
  0x32   :  { %285 = vmatmul.mubr.bf16.gmra.mxu0 %v1845_v37  ;;  %1645 = vmatpush3.bf16.msra.mxu1 %v2198_v46 }
  0x33   :  { %577 = vmatpush1.bf16.msra.mxu0 %v2163_v40  ;;  %294 = vmatprep.mubr.bf16.mxu0 %v2701_v1 }
  0x34   :  { %578 = vmatprep.subr.bf16.mxu0 %v2169_v41  ;;  %1646 = vmatprep.subr.bf16.mxu1 %v2703_v35 }
  0x36   :  { %1647 = vmatpush3.bf16.msra.mxu1 %v2219_v49 }
  0x37   :  { %579 = vmatpush1.bf16.msra.mxu0 %v2185_v44  ;;  %1648 = vmatprep.subr.bf16.mxu1 %v2703_v35 }
  0x38   :  { %580 = vmatprep.subr.bf16.mxu0 %v2192_v45 }
  0x3a   :  { %295 = vmatmul.mubr.bf16.gmra.mxu0 %v1854_v43  ;;  %1649 = vmatpush3.bf16.msra.mxu1 %v2234_v51 }
  0x3b   :  { %581 = vmatpush1.bf16.msra.mxu0 %v2207_v47  ;;  %600 = vmatprep.mubr.bf16.mxu0 %v2701_v1 }
  0x3c   :  { %582 = vmatprep.subr.bf16.mxu0 %v2213_v48  ;;  %1650 = vmatprep.subr.bf16.mxu1 %v2703_v35 }
  0x3e   :  { %1651 = vmatpush3.bf16.msra.mxu1 %v2243_v52 }
  0x3f   :  { %583 = vmatpush1.bf16.msra.mxu0 %v2226_v50  ;;  %1652 = vmatprep.subr.bf16.mxu1 %v2703_v35 }
  0x40   :  { %676 = vmatprep.subr.bf16.mxu0 %v2083_v24 }
  0x42   :  { %601 = vmatmul.mubr.bf16.vlgmr.msra.gmra.mxu0 %v1974_v53  ;;  %1653 = vmatpush3.bf16.msra.mxu1 %v2253_v54 }
  0x43   :  { %677 = vmatpush1.bf16.msra.mxu0 %v2091_v26  ;;  %708 = vmatprep.mubr.bf16.mxu0 %v2701_v1 }
  0x44   :  { %678 = vmatprep.subr.bf16.mxu0 %v2097_v27  ;;  %1658 = vmatprep.subr.bf16.mxu1 %v2703_v35 }
  0x45   :  { %1655 = vmatmul.mubr.bf16.vlgmr.msra.gmra.mxu1 %v1974_v53 }
  0x46   :  { %1659 = vmatpush3.bf16.msra.mxu1 %v2133_v34  ;;  %1674 = vmatprep.mubr.msk.bf16.mxu1 %vm1973_vm0, %v2703_v35 }
  0x47   :  { %679 = vmatpush1.bf16.msra.mxu0 %v2106_v29  ;;  %1660 = vmatprep.subr.bf16.mxu1 %v2703_v35 }
  0x48   :  { %680 = vmatprep.subr.bf16.mxu0 %v2113_v30 }
  0x4a   :  { %1661 = vmatpush3.bf16.msra.mxu1 %v2156_v39 }
  0x4b   :  { %681 = vmatpush1.bf16.msra.mxu0 %v2122_v32  ;;  %1662 = vmatprep.subr.bf16.mxu1 %v2703_v35 }
  0x4c   :  { %682 = vmatprep.subr.bf16.mxu0 %v2128_v33 }
  0x4e   :  { %1663 = vmatpush3.bf16.msra.mxu1 %v2175_v42 }
  0x4f   :  { %683 = vmatpush1.bf16.msra.mxu0 %v2140_v36  ;;  %1664 = vmatprep.subr.bf16.mxu1 %v2703_v35 }
  0x50   :  { %684 = vmatprep.subr.bf16.mxu0 %v2150_v38 }
  0x52   :  { %1665 = vmatpush3.bf16.msra.mxu1 %v2198_v46 }
  0x53   :  { %685 = vmatpush1.bf16.msra.mxu0 %v2163_v40  ;;  %1666 = vmatprep.subr.bf16.mxu1 %v2703_v35 }
  0x54   :  { %686 = vmatprep.subr.bf16.mxu0 %v2169_v41 }
  0x56   :  { %1667 = vmatpush3.bf16.msra.mxu1 %v2219_v49 }
  0x57   :  { %687 = vmatpush1.bf16.msra.mxu0 %v2185_v44  ;;  %1668 = vmatprep.subr.bf16.mxu1 %v2703_v35 }
  0x58   :  { %688 = vmatprep.subr.bf16.mxu0 %v2192_v45 }
  0x5a   :  { %1669 = vmatpush3.bf16.msra.mxu1 %v2234_v51 }
  0x5b   :  { %689 = vmatpush1.bf16.msra.mxu0 %v2207_v47  ;;  %1670 = vmatprep.subr.bf16.mxu1 %v2703_v35 }
  0x5c   :  { %690 = vmatprep.subr.bf16.mxu0 %v2213_v48 }
  0x5e   :  { %1671 = vmatpush3.bf16.msra.mxu1 %v2243_v52 }
  0x5f   :  { %691 = vmatpush1.bf16.msra.mxu0 %v2226_v50  ;;  %1672 = vmatprep.subr.bf16.mxu1 %v2703_v35 }
  0x60   :  { %786 = vmatprep.subr.bf16.mxu0 %v2083_v24 }
  0x62   :  { %1673 = vmatpush3.bf16.msra.mxu1 %v2253_v54 }
  0x63   :  { %1678 = vmatprep.subr.bf16.mxu1 %v2703_v35 }
  0xe2   :  { %v266_v59 = vpop.f32.mrf.mxu0 }
  0xe4   :  { %v268_v61 = vpop.f32.mrf.mxu0 }
  0xe5   :  { %v1632_v10 = vpop.f32.mrf.mxu1 }
  0xe6   :  { %v270_v0 = vpop.f32.mrf.mxu0  ;;  %v2304_v12 = vadd.f32 %v1632_v10, %v2297_v6 }
  0xe7   :  { %v2293_v3 = vadd.f32 %v270_v0, %v68_v62  ;;  %v339_v14 = vpop.f32.mrf.mxu1 }
  0xe8   :  { %v272_v4 = vpop.f32.mrf.mxu0 }
  0xe9   :  { %v2295_v5 = vadd.f32 %v272_v4, %v72_v2  ;;  %v1633_v17 = vpop.f32.mrf.mxu1 }
  0xea   :  { %v276_v7 = vpop.f32.mrf.mxu0  ;;  %v2311_v19 = vadd.f32 %v1633_v17, %v2297_v6 }
  0xeb   :  { %v2299_v8 = vadd.f32 %v276_v7, %v68_v62  ;;  %v342_v21 = vpop.f32.mrf.mxu1 }
  0xec   :  { %v278_v9 = vpop.f32.mrf.mxu0  ;;  %v2316_v23 = vadd.f32 %v342_v21, %v2297_v6  ;;  %v267_v21 = vadd.f32 %v266_v59, %v68_v62 }
  0xed   :  { %v2301_v11 = vadd.f32 %v278_v9, %v72_v2  ;;  %v1636_v28 = vpop.f32.mrf.mxu1 }
  0xee   :  { %v280_v13 = vpop.f32.mrf.mxu0  ;;  %v2321_v37 = vadd.f32 %v1636_v28, %v2297_v6 }
  0xef   :  { %v2306_v15 = vadd.f32 %v280_v13, %v68_v62  ;;  %v355_v53 = vpop.f32.mrf.mxu1 }
  0xf0   :  { %v282_v16 = vpop.f32.mrf.mxu0  ;;  %2705 = vst [vmem:[#allocation3_spill] sm:$0xff] %v2321_v37  ;;  %v2326_v56 = vadd.f32 %v355_v53, %v2297_v6 }
  0xf1   :  { %v2308_v18 = vadd.f32 %v282_v16, %v72_v2  ;;  %v1637_v58 = vpop.f32.mrf.mxu1 }
  0xf2   :  { %v286_v20 = vpop.f32.mrf.mxu0  ;;  %v2331_v63 = vadd.f32 %v1637_v58, %v2297_v6 }
  0xf3   :  { %v2313_v22 = vadd.f32 %v286_v20, %v68_v62  ;;  %v358_v4 = vpop.f32.mrf.mxu1 }
  0xf4   :  { %v288_v25 = vpop.f32.mrf.mxu0  ;;  %2706 = vst [vmem:[#allocation4_spill] sm:$0xff] %v2331_v63  ;;  %v2336_v9 = vadd.f32 %v358_v4, %v2297_v6 }
  0xf5   :  { %v2318_v31 = vadd.f32 %v288_v25, %v72_v2 }
  0xf6   :  { %v290_v43 = vpop.f32.mrf.mxu0 }
  0xf7   :  { %v2323_v55 = vadd.f32 %v290_v43, %v68_v62 }
  0xf8   :  { %v292_v57 = vpop.f32.mrf.mxu0 }
  0xf9   :  { %v2328_v60 = vadd.f32 %v292_v57, %v72_v2 }
  0xfa   :  { %v296_v0 = vpop.f32.mrf.mxu0 }
  0xfb   :  { %v2333_v7 = vadd.f32 %v296_v0, %v68_v62  ;;  %v269_v0 = vadd.f32 %v268_v61, %v72_v2 }
  0xfc   :  { %v298_v10 = vpop.f32.mrf.mxu0 }
  0xfd   :  { %v2338_v13 = vadd.f32 %v298_v10, %v72_v2 }
  0xfe   :  { %v300_v16 = vpop.f32.mrf.mxu0 }
  0xff   :  { %2707 = vst [vmem:[#allocation5_spill] sm:$0xff] %v2338_v13  ;;  %v2340_v17 = vadd.f32 %v300_v16, %v68_v62  ;;  %v2347_v62 = vld [vmem:[%s2698_s4] ss:$0 sm:$0xff] }
 0x100   :  { %v302_v20 = vpop.f32.mrf.mxu0 }
 0x101   :  { %2708 = vst [vmem:[#allocation6_spill] sm:$0xff] %v2340_v17  ;;  %v2342_v25 = vadd.f32 %v302_v20, %v72_v2  ;;  %v340_v2 = vadd.f32 %v339_v14, %v2297_v6  ;;  %v2709_v6 = vmov 0.0   ;;  %v2710_v14 = vmov 0  }
 0x102   :  { %v602_v28 = vpop.f32.mrf.mxu0 }
 0x103   :  { %v652_v43 = vadd.f32 %v602_v28, %v267_v21 }
 0x104   :  { %v604_v53 = vpop.f32.mrf.mxu0 }
 0x105   :  { %v1507_v57 = vmul.f32 -1.442695, %v652_v43  ;;  %v659_v4 = vadd.f32 %v604_v53, %v269_v0  ;;  %v643_v35 = vpop.f32.mrf.mxu1 }
 0x106   :  { %v606_v58 = vpop.f32.mrf.mxu0  ;;  %v666_v61 = vadd.f32 %v2347_v62, %v643_v35 }
 0x107   :  { %1869 = vpow2.f32 %v1507_v57  ;;  %v1508_v63 = vmul.f32 -1.442695, %v659_v4  ;;  %v1656_v10 = vpop.f32.mrf.mxu1 }
 0x108   :  { %v607_v1 = vpop.f32.mrf.mxu0 }
 0x109   :  { %v646_v37 = vpop.f32.mrf.mxu1  ;;  %1871 = vpow2.f32 %v1508_v63 }
 0x10b   :  { %v1657_v16 = vpop.f32.mrf.mxu1 }
 0x114   :  { %v1870_v17 = vpop.eup %1869 }
 0x115   :  { %v656_v13 = vadd.f32 1.0, %v1870_v17 }
 0x116   :  { %v1872_v59 = vpop.eup %1871 }
 0x117   :  { %1873 = vrcp.f32 %v656_v13  ;;  %v663_v20 = vadd.f32 1.0, %v1872_v59 }
 0x119   :  { %1875 = vrcp.f32 %v663_v20 }
 0x124   :  { %v1874_v1 = vpop.eup %1873 }
 0x125   :  { %v667_v21 = vmul.f32 %v1874_v1, %v666_v61 }
 0x126   :  { %v1876_v63 = vpop.eup %1875 }
 0x127   :  { %v668_v37 = vadd.f32 %v667_v21, %v340_v2  ;;  %v670_v28 = vsub.f32 1.0, %v1876_v63  ;;  %v672_v43 = vmul.f32 0.0, %v1876_v63 }
 0x129   :  { %1877 = vtanh.f32 %v668_v37 }
 0x136   :  { %v1878_v17 = vpop.eup %1877 }
 0x137   :  { %v671_v13 = vmul.f32 %v1878_v17, %v670_v28 }
 0x139   :  { %v2351_v53 = vadd.f32 %v672_v43, %v671_v13 }
 0x13b   :  { %674 = vst [vmem:[%s2699_s5] sm:$0xff] %v2351_v53  ;;  %v675_v35 = vpack.c.bf16 %v2351_v53, %v2351_v53 }
 0x13d   :  { %709 = vmatmul.mubr.bf16.vlgmr.msra.gmra.mxu0 %v675_v35  ;;  %1675 = vmatmul.mubr.bf16.vlgmr.msra.gmra.mxu1 %v675_v35 }
 0x13e   :  { %787 = vmatpush1.bf16.msra.mxu0 %v2091_v26  ;;  %1679 = vmatpush3.bf16.msra.mxu1 %v2133_v34 }
 0x13f   :  { %788 = vmatprep.subr.bf16.mxu0 %v2097_v27  ;;  %1680 = vmatprep.subr.bf16.mxu1 %v2709_v6 }
 0x140   :  { %818 = vmatprep.mubr.bf16.mxu0 %v2710_v14  ;;  %1694 = vmatprep.mubr.msk.bf16.mxu1 %vm1973_vm0, %v2709_v6 }
 0x142   :  { %789 = vmatpush1.bf16.msra.mxu0 %v2106_v29  ;;  %1681 = vmatpush3.bf16.msra.mxu1 %v2156_v39 }
 0x143   :  { %790 = vmatprep.subr.bf16.mxu0 %v2113_v30  ;;  %1682 = vmatprep.subr.bf16.mxu1 %v2709_v6 }
 0x146   :  { %791 = vmatpush1.bf16.msra.mxu0 %v2122_v32  ;;  %1683 = vmatpush3.bf16.msra.mxu1 %v2175_v42 }
 0x147   :  { %792 = vmatprep.subr.bf16.mxu0 %v2128_v33  ;;  %1684 = vmatprep.subr.bf16.mxu1 %v2709_v6 }
 0x14a   :  { %793 = vmatpush1.bf16.msra.mxu0 %v2140_v36  ;;  %1685 = vmatpush3.bf16.msra.mxu1 %v2198_v46 }
 0x14b   :  { %794 = vmatprep.subr.bf16.mxu0 %v2150_v38  ;;  %1686 = vmatprep.subr.bf16.mxu1 %v2709_v6 }
 0x14e   :  { %795 = vmatpush1.bf16.msra.mxu0 %v2163_v40  ;;  %1687 = vmatpush3.bf16.msra.mxu1 %v2219_v49 }
 0x14f   :  { %796 = vmatprep.subr.bf16.mxu0 %v2169_v41  ;;  %1688 = vmatprep.subr.bf16.mxu1 %v2709_v6 }
 0x152   :  { %797 = vmatpush1.bf16.msra.mxu0 %v2185_v44  ;;  %1689 = vmatpush3.bf16.msra.mxu1 %v2234_v51 }
 0x153   :  { %798 = vmatprep.subr.bf16.mxu0 %v2192_v45  ;;  %1690 = vmatprep.subr.bf16.mxu1 %v2709_v6 }
 0x156   :  { %799 = vmatpush1.bf16.msra.mxu0 %v2207_v47  ;;  %1691 = vmatpush3.bf16.msra.mxu1 %v2243_v52 }
 0x157   :  { %800 = vmatprep.subr.bf16.mxu0 %v2213_v48  ;;  %1692 = vmatprep.subr.bf16.mxu1 %v2709_v6 }
 0x15a   :  { %801 = vmatpush1.bf16.msra.mxu0 %v2226_v50  ;;  %1693 = vmatpush3.bf16.msra.mxu1 %v2253_v54 }
 0x15b   :  { %896 = vmatprep.subr.bf16.mxu0 %v2083_v24  ;;  %1698 = vmatprep.subr.bf16.mxu1 %v2709_v6 }
 0x1fd   :  { %v710_v57 = vpop.f32.mrf.mxu0  ;;  %v751_v58 = vpop.f32.mrf.mxu1 }
 0x1fe   :  { %v761_v0 = vadd.f32 %v710_v57, %v2293_v3  ;;  %v775_v13 = vadd.f32 %v2347_v62, %v751_v58 }
 0x1ff   :  { %v712_v4 = vpop.f32.mrf.mxu0  ;;  %v1676_v10 = vpop.f32.mrf.mxu1 }
 0x200   :  { %v1509_v16 = vmul.f32 -1.442695, %v761_v0  ;;  %v768_v2 = vadd.f32 %v712_v4, %v2295_v5 }
 0x201   :  { %v714_v59 = vpop.f32.mrf.mxu0  ;;  %v754_v20 = vpop.f32.mrf.mxu1 }
 0x202   :  { %1879 = vpow2.f32 %v1509_v16  ;;  %v1510_v21 = vmul.f32 -1.442695, %v768_v2 }
 0x203   :  { %v715_v61 = vpop.f32.mrf.mxu0  ;;  %v1677_v1 = vpop.f32.mrf.mxu1 }
 0x204   :  { %1881 = vpow2.f32 %v1510_v21 }
 0x20f   :  { %v1880_v37 = vpop.eup %1879 }
 0x210   :  { %v765_v63 = vadd.f32 1.0, %v1880_v37 }
 0x211   :  { %v1882_v28 = vpop.eup %1881 }
 0x212   :  { %1883 = vrcp.f32 %v765_v63  ;;  %v772_v17 = vadd.f32 1.0, %v1882_v28 }
 0x214   :  { %1885 = vrcp.f32 %v772_v17 }
 0x21f   :  { %v1884_v3 = vpop.eup %1883 }
 0x220   :  { %v776_v43 = vmul.f32 %v1884_v3, %v775_v13 }
 0x221   :  { %v1886_v57 = vpop.eup %1885 }
 0x222   :  { %v777_v35 = vadd.f32 %v776_v43, %v2316_v23  ;;  %v779_v0 = vsub.f32 1.0, %v1886_v57  ;;  %v781_v5 = vmul.f32 %v1886_v57, %v2351_v53 }
 0x224   :  { %1887 = vtanh.f32 %v777_v35 }
 0x231   :  { %v1888_v10 = vpop.eup %1887 }
 0x232   :  { %v780_v16 = vmul.f32 %v1888_v10, %v779_v0 }
 0x234   :  { %v2399_v4 = vadd.f32 %v781_v5, %v780_v16 }
 0x236   :  { %1511 = vst [vmem:[%s2699_s5 + $0x8] sm:$0xff] %v2399_v4  ;;  %v785_v58 = vpack.c.bf16 %v2399_v4, %v2399_v4 }
 0x238   :  { %819 = vmatmul.mubr.bf16.vlgmr.msra.gmra.mxu0 %v785_v58  ;;  %1695 = vmatmul.mubr.bf16.vlgmr.msra.gmra.mxu1 %v785_v58 }
 0x239   :  { %897 = vmatpush1.bf16.msra.mxu0 %v2091_v26  ;;  %1699 = vmatpush3.bf16.msra.mxu1 %v2133_v34 }
 0x23a   :  { %898 = vmatprep.subr.bf16.mxu0 %v2097_v27  ;;  %1700 = vmatprep.subr.bf16.mxu1 %v2709_v6 }
 0x23b   :  { %928 = vmatprep.mubr.bf16.mxu0 %v2710_v14  ;;  %1714 = vmatprep.mubr.msk.bf16.mxu1 %vm1973_vm0, %v2709_v6 }
 0x23d   :  { %899 = vmatpush1.bf16.msra.mxu0 %v2106_v29  ;;  %1701 = vmatpush3.bf16.msra.mxu1 %v2156_v39 }
 0x23e   :  { %900 = vmatprep.subr.bf16.mxu0 %v2113_v30  ;;  %1702 = vmatprep.subr.bf16.mxu1 %v2709_v6 }
 0x241   :  { %901 = vmatpush1.bf16.msra.mxu0 %v2122_v32  ;;  %1703 = vmatpush3.bf16.msra.mxu1 %v2175_v42 }
 0x242   :  { %902 = vmatprep.subr.bf16.mxu0 %v2128_v33  ;;  %1704 = vmatprep.subr.bf16.mxu1 %v2709_v6 }
 0x245   :  { %903 = vmatpush1.bf16.msra.mxu0 %v2140_v36  ;;  %1705 = vmatpush3.bf16.msra.mxu1 %v2198_v46 }
 0x246   :  { %904 = vmatprep.subr.bf16.mxu0 %v2150_v38  ;;  %1706 = vmatprep.subr.bf16.mxu1 %v2709_v6 }
 0x249   :  { %905 = vmatpush1.bf16.msra.mxu0 %v2163_v40  ;;  %1707 = vmatpush3.bf16.msra.mxu1 %v2219_v49 }
 0x24a   :  { %906 = vmatprep.subr.bf16.mxu0 %v2169_v41  ;;  %1708 = vmatprep.subr.bf16.mxu1 %v2709_v6 }
 0x24d   :  { %907 = vmatpush1.bf16.msra.mxu0 %v2185_v44  ;;  %1709 = vmatpush3.bf16.msra.mxu1 %v2234_v51 }
 0x24e   :  { %908 = vmatprep.subr.bf16.mxu0 %v2192_v45  ;;  %1710 = vmatprep.subr.bf16.mxu1 %v2709_v6 }
 0x251   :  { %909 = vmatpush1.bf16.msra.mxu0 %v2207_v47  ;;  %1711 = vmatpush3.bf16.msra.mxu1 %v2243_v52 }
 0x252   :  { %910 = vmatprep.subr.bf16.mxu0 %v2213_v48  ;;  %1712 = vmatprep.subr.bf16.mxu1 %v2709_v6 }
 0x255   :  { %911 = vmatpush1.bf16.msra.mxu0 %v2226_v50  ;;  %1713 = vmatpush3.bf16.msra.mxu1 %v2253_v54 }
 0x256   :  { %1006 = vmatprep.subr.bf16.mxu0 %v2083_v24  ;;  %1718 = vmatprep.subr.bf16.mxu1 %v2709_v6 }
 0x2f8   :  { %v820_v23 = vpop.f32.mrf.mxu0  ;;  %v861_v53 = vpop.f32.mrf.mxu1 }
 0x2f9   :  { %v871_v59 = vadd.f32 %v820_v23, %v2299_v8  ;;  %v885_v57 = vadd.f32 %v2347_v62, %v861_v53 }
 0x2fa   :  { %v822_v20 = vpop.f32.mrf.mxu0  ;;  %v1696_v61 = vpop.f32.mrf.mxu1 }
 0x2fb   :  { %v1512_v1 = vmul.f32 -1.442695, %v871_v59  ;;  %v878_v28 = vadd.f32 %v822_v20, %v2301_v11 }
 0x2fc   :  { %v824_v2 = vpop.f32.mrf.mxu0  ;;  %v864_v21 = vpop.f32.mrf.mxu1 }
 0x2fd   :  { %1889 = vpow2.f32 %v1512_v1  ;;  %v1513_v17 = vmul.f32 -1.442695, %v878_v28 }
 0x2fe   :  { %v825_v37 = vpop.f32.mrf.mxu0  ;;  %v1697_v63 = vpop.f32.mrf.mxu1 }
 0x2ff   :  { %1891 = vpow2.f32 %v1513_v17 }
 0x30a   :  { %v1890_v13 = vpop.eup %1889 }
 0x30b   :  { %v875_v3 = vadd.f32 1.0, %v1890_v13 }
 0x30c   :  { %v1892_v43 = vpop.eup %1891 }
 0x30d   :  { %1893 = vrcp.f32 %v875_v3  ;;  %v882_v35 = vadd.f32 1.0, %v1892_v43 }
 0x30f   :  { %1895 = vrcp.f32 %v882_v35 }
 0x31a   :  { %v1894_v8 = vpop.eup %1893 }
 0x31b   :  { %v886_v0 = vmul.f32 %v1894_v8, %v885_v57 }
 0x31c   :  { %v1896_v16 = vpop.eup %1895 }
 0x31d   :  { %v887_v10 = vadd.f32 %v886_v0, %v2304_v12  ;;  %v889_v5 = vsub.f32 1.0, %v1896_v16  ;;  %v891_v11 = vmul.f32 %v1896_v16, %v2399_v4 }
 0x31f   :  { %1897 = vtanh.f32 %v887_v10 }
 0x32c   :  { %v1898_v58 = vpop.eup %1897 }
 0x32d   :  { %v890_v23 = vmul.f32 %v1898_v58, %v889_v5 }
 0x32f   :  { %v2447_v59 = vadd.f32 %v891_v11, %v890_v23 }
 0x331   :  { %1514 = vst [vmem:[%s2699_s5 + $0x10] sm:$0xff] %v2447_v59  ;;  %v895_v53 = vpack.c.bf16 %v2447_v59, %v2447_v59 }
 0x333   :  { %929 = vmatmul.mubr.bf16.vlgmr.msra.gmra.mxu0 %v895_v53  ;;  %1715 = vmatmul.mubr.bf16.vlgmr.msra.gmra.mxu1 %v895_v53 }
 0x334   :  { %1007 = vmatpush1.bf16.msra.mxu0 %v2091_v26  ;;  %1719 = vmatpush3.bf16.msra.mxu1 %v2133_v34 }
 0x335   :  { %1008 = vmatprep.subr.bf16.mxu0 %v2097_v27  ;;  %1720 = vmatprep.subr.bf16.mxu1 %v2709_v6 }
 0x336   :  { %1038 = vmatprep.mubr.bf16.mxu0 %v2710_v14  ;;  %1734 = vmatprep.mubr.msk.bf16.mxu1 %vm1973_vm0, %v2709_v6 }
 0x338   :  { %1009 = vmatpush1.bf16.msra.mxu0 %v2106_v29  ;;  %1721 = vmatpush3.bf16.msra.mxu1 %v2156_v39 }
 0x339   :  { %1010 = vmatprep.subr.bf16.mxu0 %v2113_v30  ;;  %1722 = vmatprep.subr.bf16.mxu1 %v2709_v6 }
 0x33c   :  { %1011 = vmatpush1.bf16.msra.mxu0 %v2122_v32  ;;  %1723 = vmatpush3.bf16.msra.mxu1 %v2175_v42 }
 0x33d   :  { %1012 = vmatprep.subr.bf16.mxu0 %v2128_v33  ;;  %1724 = vmatprep.subr.bf16.mxu1 %v2709_v6 }
 0x340   :  { %1013 = vmatpush1.bf16.msra.mxu0 %v2140_v36  ;;  %1725 = vmatpush3.bf16.msra.mxu1 %v2198_v46 }
 0x341   :  { %1014 = vmatprep.subr.bf16.mxu0 %v2150_v38  ;;  %1726 = vmatprep.subr.bf16.mxu1 %v2709_v6 }
 0x344   :  { %1015 = vmatpush1.bf16.msra.mxu0 %v2163_v40  ;;  %1727 = vmatpush3.bf16.msra.mxu1 %v2219_v49 }
 0x345   :  { %1016 = vmatprep.subr.bf16.mxu0 %v2169_v41  ;;  %1728 = vmatprep.subr.bf16.mxu1 %v2709_v6 }
 0x348   :  { %1017 = vmatpush1.bf16.msra.mxu0 %v2185_v44  ;;  %1729 = vmatpush3.bf16.msra.mxu1 %v2234_v51 }
 0x349   :  { %1018 = vmatprep.subr.bf16.mxu0 %v2192_v45  ;;  %1730 = vmatprep.subr.bf16.mxu1 %v2709_v6 }
 0x34c   :  { %1019 = vmatpush1.bf16.msra.mxu0 %v2207_v47  ;;  %1731 = vmatpush3.bf16.msra.mxu1 %v2243_v52 }
 0x34d   :  { %1020 = vmatprep.subr.bf16.mxu0 %v2213_v48  ;;  %1732 = vmatprep.subr.bf16.mxu1 %v2709_v6 }
 0x350   :  { %1021 = vmatpush1.bf16.msra.mxu0 %v2226_v50  ;;  %1733 = vmatpush3.bf16.msra.mxu1 %v2253_v54 }
 0x351   :  { %1116 = vmatprep.subr.bf16.mxu0 %v2083_v24  ;;  %1738 = vmatprep.subr.bf16.mxu1 %v2709_v6 }
 0x3f3   :  { %v930_v12 = vpop.f32.mrf.mxu0  ;;  %v971_v4 = vpop.f32.mrf.mxu1 }
 0x3f4   :  { %v981_v20 = vadd.f32 %v930_v12, %v2306_v15  ;;  %v995_v8 = vadd.f32 %v2347_v62, %v971_v4 }
 0x3f5   :  { %v932_v61 = vpop.f32.mrf.mxu0  ;;  %v1716_v1 = vpop.f32.mrf.mxu1 }
 0x3f6   :  { %v1515_v2 = vmul.f32 -1.442695, %v981_v20  ;;  %v988_v17 = vadd.f32 %v932_v61, %v2308_v18 }
 0x3f7   :  { %v934_v21 = vpop.f32.mrf.mxu0  ;;  %v974_v37 = vpop.f32.mrf.mxu1 }
 0x3f8   :  { %1899 = vpow2.f32 %v1515_v2  ;;  %v1516_v13 = vmul.f32 -1.442695, %v988_v17 }
 0x3f9   :  { %v935_v63 = vpop.f32.mrf.mxu0  ;;  %v1717_v28 = vpop.f32.mrf.mxu1 }
 0x3fa   :  { %1901 = vpow2.f32 %v1516_v13 }
 0x405   :  { %v1900_v3 = vpop.eup %1899 }
 0x406   :  { %v985_v43 = vadd.f32 1.0, %v1900_v3 }
 0x407   :  { %v1902_v35 = vpop.eup %1901 }
 0x408   :  { %1903 = vrcp.f32 %v985_v43  ;;  %v992_v57 = vadd.f32 1.0, %v1902_v35 }
 0x40a   :  { %1905 = vrcp.f32 %v992_v57 }
 0x415   :  { %v1904_v15 = vpop.eup %1903 }
 0x416   :  { %v996_v0 = vmul.f32 %v1904_v15, %v995_v8 }
 0x417   :  { %v1906_v16 = vpop.eup %1905 }
 0x418   :  { %v997_v10 = vadd.f32 %v996_v0, %v2311_v19  ;;  %v999_v5 = vsub.f32 1.0, %v1906_v16  ;;  %v1001_v18 = vmul.f32 %v1906_v16, %v2447_v59 }
 0x41a   :  { %1907 = vtanh.f32 %v997_v10 }
 0x427   :  { %v1908_v58 = vpop.eup %1907 }
 0x428   :  { %v1000_v23 = vmul.f32 %v1908_v58, %v999_v5 }
 0x42a   :  { %v2495_v11 = vadd.f32 %v1001_v18, %v1000_v23 }
 0x42c   :  { %1517 = vst [vmem:[%s2699_s5 + $0x18] sm:$0xff] %v2495_v11  ;;  %v1005_v53 = vpack.c.bf16 %v2495_v11, %v2495_v11 }
 0x42e   :  { %1039 = vmatmul.mubr.bf16.vlgmr.msra.gmra.mxu0 %v1005_v53  ;;  %1735 = vmatmul.mubr.bf16.vlgmr.msra.gmra.mxu1 %v1005_v53  ;;  %v1951_v53 = vld [vmem:[%s2696_s2 + $0xb0] ss:$12 sps:$4 sm:$0xff]  }
 0x42f   :  { %1117 = vmatpush1.bf16.msra.mxu0 %v2091_v26  ;;  %1739 = vmatpush3.bf16.msra.mxu1 %v2133_v34 }
 0x430   :  { %1118 = vmatprep.subr.bf16.mxu0 %v2097_v27  ;;  %1740 = vmatprep.subr.bf16.mxu1 %v2709_v6 }
 0x431   :  { %1148 = vmatprep.mubr.bf16.mxu0 %v2710_v14  ;;  %1754 = vmatprep.mubr.msk.bf16.mxu1 %vm1973_vm0, %v2709_v6 }
 0x433   :  { %1119 = vmatpush1.bf16.msra.mxu0 %v2106_v29  ;;  %1741 = vmatpush3.bf16.msra.mxu1 %v2156_v39 }
 0x434   :  { %1120 = vmatprep.subr.bf16.mxu0 %v2113_v30  ;;  %1742 = vmatprep.subr.bf16.mxu1 %v2709_v6 }
 0x437   :  { %1121 = vmatpush1.bf16.msra.mxu0 %v2122_v32  ;;  %1743 = vmatpush3.bf16.msra.mxu1 %v2175_v42 }
 0x438   :  { %1122 = vmatprep.subr.bf16.mxu0 %v2128_v33  ;;  %1744 = vmatprep.subr.bf16.mxu1 %v2709_v6 }
 0x43b   :  { %1123 = vmatpush1.bf16.msra.mxu0 %v2140_v36  ;;  %1745 = vmatpush3.bf16.msra.mxu1 %v2198_v46 }
 0x43c   :  { %1124 = vmatprep.subr.bf16.mxu0 %v2150_v38  ;;  %1746 = vmatprep.subr.bf16.mxu1 %v2709_v6 }
 0x43f   :  { %1125 = vmatpush1.bf16.msra.mxu0 %v2163_v40  ;;  %1747 = vmatpush3.bf16.msra.mxu1 %v2219_v49 }
 0x440   :  { %1126 = vmatprep.subr.bf16.mxu0 %v2169_v41  ;;  %1748 = vmatprep.subr.bf16.mxu1 %v2709_v6 }
 0x443   :  { %1127 = vmatpush1.bf16.msra.mxu0 %v2185_v44  ;;  %1749 = vmatpush3.bf16.msra.mxu1 %v2234_v51 }
 0x444   :  { %1128 = vmatprep.subr.bf16.mxu0 %v2192_v45  ;;  %1750 = vmatprep.subr.bf16.mxu1 %v2709_v6 }
 0x447   :  { %1129 = vmatpush1.bf16.msra.mxu0 %v2207_v47  ;;  %1751 = vmatpush3.bf16.msra.mxu1 %v2243_v52 }
 0x448   :  { %1130 = vmatprep.subr.bf16.mxu0 %v2213_v48  ;;  %1752 = vmatprep.subr.bf16.mxu1 %v2709_v6 }
 0x44b   :  { %1131 = vmatpush1.bf16.msra.mxu0 %v2226_v50  ;;  %1753 = vmatpush3.bf16.msra.mxu1 %v2253_v54 }
 0x44c   :  { %1226 = vmatprep.subr.bf16.mxu0 %v2083_v24  ;;  %1758 = vmatprep.subr.bf16.mxu1 %v2709_v6 }
 0x4ee   :  { %v1040_v19 = vpop.f32.mrf.mxu0  ;;  %v1081_v59 = vpop.f32.mrf.mxu1 }
 0x4ef   :  { %v1091_v12 = vadd.f32 %v1040_v19, %v2313_v22  ;;  %v1105_v43 = vadd.f32 %v2347_v62, %v1081_v59  ;;  %v1952_v19 = vld [vmem:[%s2696_s2 + $0x94] ss:$12 sps:$4 sm:$0xff]   ;;  %v1953_v59 = vld [vmem:[%s2696_s2 + $0x90] ss:$12 sps:$4 sm:$0xff]  }
 0x4f0   :  { %v1042_v4 = vpop.f32.mrf.mxu0  ;;  %v1736_v20 = vpop.f32.mrf.mxu1 }
 0x4f1   :  { %v1518_v61 = vmul.f32 -1.442695, %v1091_v12  ;;  %v1098_v63 = vadd.f32 %v1042_v4, %v2318_v31  ;;  %v1954_v12 = vld [vmem:[%s2696_s2 + $0x98] ss:$12 sps:$4 sm:$0xff]   ;;  %v1955_v4 = vld [vmem:[%s2696_s2 + $0x7c] ss:$12 sps:$4 sm:$0xff]  }
 0x4f2   :  { %v1044_v1 = vpop.f32.mrf.mxu0  ;;  %v1084_v2 = vpop.f32.mrf.mxu1  ;;  %v1957_v20 = vld [vmem:[%s2696_s2 + $0x80] ss:$12 sps:$4 sm:$0xff]  }
 0x4f3   :  { %1909 = vpow2.f32 %v1518_v61  ;;  %v1519_v28 = vmul.f32 -1.442695, %v1098_v63  ;;  %v1958_v61 = vld [vmem:[%s2696_s2 + $0x64] ss:$12 sps:$4 sm:$0xff]   ;;  %v1959_v1 = vld [vmem:[%s2696_s2 + $0x60] ss:$12 sps:$4 sm:$0xff]  }
 0x4f4   :  { %v1045_v21 = vpop.f32.mrf.mxu0  ;;  %v1737_v37 = vpop.f32.mrf.mxu1  ;;  %v1960_v2 = vld [vmem:[%s2696_s2 + $0x68] ss:$12 sps:$4 sm:$0xff]   ;;  %v1963_v63 = vld [vmem:[%s2696_s2 + $0x50] ss:$12 sps:$4 sm:$0xff]  }
 0x4f5   :  { %1911 = vpow2.f32 %v1519_v28  ;;  %v1961_v21 = vld [vmem:[%s2696_s2 + $0x4c] ss:$12 sps:$4 sm:$0xff]   ;;  %v1962_v37 = vld [vmem:[%s2696_s2 + $0x48] ss:$12 sps:$4 sm:$0xff]  }
 0x4f6   :  { %v1964_v28 = vld [vmem:[%s2696_s2 + $0x34] ss:$12 sps:$4 sm:$0xff]  }
 0x500   :  { %v1910_v17 = vpop.eup %1909 }
 0x501   :  { %v1095_v24 = vadd.f32 1.0, %v1910_v17  ;;  %v1965_v17 = vld [vmem:[%s2696_s2 + $0x30] ss:$12 sps:$4 sm:$0xff]  }
 0x502   :  { %v1912_v13 = vpop.eup %1911 }
 0x503   :  { %1913 = vrcp.f32 %v1095_v24  ;;  %v1102_v3 = vadd.f32 1.0, %v1912_v13  ;;  %v1966_v24 = vld [vmem:[%s2696_s2 + $0x38] ss:$12 sps:$4 sm:$0xff]   ;;  %v1967_v13 = vld [vmem:[%s2696_s2 + $0x1c] ss:$12 sps:$4 sm:$0xff]  }
 0x505   :  { %1915 = vrcp.f32 %v1102_v3  ;;  %v1968_v3 = vld [vmem:[%s2696_s2 + $0x18] ss:$12 sps:$4 sm:$0xff]  }
 0x510   :  { %v1914_v22 = vpop.eup %1913 }
 0x511   :  { %v1106_v35 = vmul.f32 %v1914_v22, %v1105_v43  ;;  %v1969_v43 = vld [vmem:[%s2696_s2 + $0x4] ss:$12 sps:$4 sm:$0xff]   ;;  %v1970_v22 = vld [vmem:[%s2696_s2] ss:$12 sps:$4 sm:$0xff]  }
 0x512   :  { %v1916_v8 = vpop.eup %1915 }
 0x513   :  { %v1107_v57 = vadd.f32 %v1106_v35, %v2326_v56  ;;  %v1109_v15 = vsub.f32 1.0, %v1916_v8  ;;  %v1111_v31 = vmul.f32 %v1916_v8, %v2495_v11 }
 0x515   :  { %1917 = vtanh.f32 %v1107_v57 }
 0x522   :  { %v1918_v0 = vpop.eup %1917 }
 0x523   :  { %v1110_v10 = vmul.f32 %v1918_v0, %v1109_v15 }
 0x525   :  { %v2543_v16 = vadd.f32 %v1111_v31, %v1110_v10 }
 0x527   :  { %1520 = vst [vmem:[%s2699_s5 + $0x20] sm:$0xff] %v2543_v16  ;;  %v1115_v5 = vpack.c.bf16 %v2543_v16, %v2543_v16 }
 0x529   :  { %1149 = vmatmul.mubr.bf16.vlgmr.msra.gmra.mxu0 %v1115_v5  ;;  %1755 = vmatmul.mubr.bf16.vlgmr.msra.gmra.mxu1 %v1115_v5 }
 0x52a   :  { %1227 = vmatpush1.bf16.msra.mxu0 %v2091_v26  ;;  %1759 = vmatpush3.bf16.msra.mxu1 %v2133_v34  ;;  %v1949_v26 = vld [vmem:[%s2696_s2 + $0xac] ss:$12 sps:$4 sm:$0xff]  }
 0x52b   :  { %1228 = vmatprep.subr.bf16.mxu0 %v2097_v27  ;;  %1760 = vmatprep.subr.bf16.mxu1 %v2709_v6 }
 0x52c   :  { %1258 = vmatprep.mubr.bf16.mxu0 %v2710_v14  ;;  %1774 = vmatprep.mubr.msk.bf16.mxu1 %vm1973_vm0, %v2709_v6 }
 0x52e   :  { %1229 = vmatpush1.bf16.msra.mxu0 %v2106_v29  ;;  %1761 = vmatpush3.bf16.msra.mxu1 %v2156_v39 }
 0x52f   :  { %1230 = vmatprep.subr.bf16.mxu0 %v2113_v30  ;;  %1762 = vmatprep.subr.bf16.mxu1 %v2709_v6 }
 0x532   :  { %1231 = vmatpush1.bf16.msra.mxu0 %v2122_v32  ;;  %1763 = vmatpush3.bf16.msra.mxu1 %v2175_v42 }
 0x533   :  { %1232 = vmatprep.subr.bf16.mxu0 %v2128_v33  ;;  %1764 = vmatprep.subr.bf16.mxu1 %v2709_v6 }
 0x536   :  { %1233 = vmatpush1.bf16.msra.mxu0 %v2140_v36  ;;  %1765 = vmatpush3.bf16.msra.mxu1 %v2198_v46 }
 0x537   :  { %1234 = vmatprep.subr.bf16.mxu0 %v2150_v38  ;;  %1766 = vmatprep.subr.bf16.mxu1 %v2709_v6 }
 0x53a   :  { %1235 = vmatpush1.bf16.msra.mxu0 %v2163_v40  ;;  %1767 = vmatpush3.bf16.msra.mxu1 %v2219_v49 }
 0x53b   :  { %1236 = vmatprep.subr.bf16.mxu0 %v2169_v41  ;;  %1768 = vmatprep.subr.bf16.mxu1 %v2709_v6 }
 0x53e   :  { %1237 = vmatpush1.bf16.msra.mxu0 %v2185_v44  ;;  %1769 = vmatpush3.bf16.msra.mxu1 %v2234_v51 }
 0x53f   :  { %1238 = vmatprep.subr.bf16.mxu0 %v2192_v45  ;;  %1770 = vmatprep.subr.bf16.mxu1 %v2709_v6 }
 0x542   :  { %1239 = vmatpush1.bf16.msra.mxu0 %v2207_v47  ;;  %1771 = vmatpush3.bf16.msra.mxu1 %v2243_v52 }
 0x543   :  { %1240 = vmatprep.subr.bf16.mxu0 %v2213_v48  ;;  %1772 = vmatprep.subr.bf16.mxu1 %v2709_v6 }
 0x546   :  { %1241 = vmatpush1.bf16.msra.mxu0 %v2226_v50  ;;  %1773 = vmatpush3.bf16.msra.mxu1 %v2253_v54 }
 0x547   :  { %1336 = vmatprep.subr.bf16.mxu0 %v1949_v26  ;;  %1778 = vmatprep.subr.bf16.mxu1 %v2709_v6 }
 0x5e9   :  { %v1150_v27 = vpop.f32.mrf.mxu0  ;;  %v1191_v29 = vpop.f32.mrf.mxu1 }
 0x5ea   :  { %v1201_v30 = vadd.f32 %v1150_v27, %v2323_v55  ;;  %v1215_v48 = vadd.f32 %v2347_v62, %v1191_v29 }
 0x5eb   :  { %v1152_v32 = vpop.f32.mrf.mxu0  ;;  %v1756_v33 = vpop.f32.mrf.mxu1 }
 0x5ec   :  { %v1521_v34 = vmul.f32 -1.442695, %v1201_v30  ;;  %v1208_v41 = vadd.f32 %v1152_v32, %v2328_v60 }
 0x5ed   :  { %v1154_v36 = vpop.f32.mrf.mxu0  ;;  %v1194_v38 = vpop.f32.mrf.mxu1 }
 0x5ee   :  { %1919 = vpow2.f32 %v1521_v34  ;;  %v1522_v42 = vmul.f32 -1.442695, %v1208_v41  ;;  %v2712_v36 = vld [vmem:[#allocation3_spill] sm:$0xff] }
 0x5ef   :  { %v1155_v39 = vpop.f32.mrf.mxu0  ;;  %v1757_v40 = vpop.f32.mrf.mxu1 }
 0x5f0   :  { %1921 = vpow2.f32 %v1522_v42 }
 0x5fb   :  { %v1920_v44 = vpop.eup %1919 }
 0x5fc   :  { %v1205_v45 = vadd.f32 1.0, %v1920_v44 }
 0x5fd   :  { %v1922_v46 = vpop.eup %1921 }
 0x5fe   :  { %1923 = vrcp.f32 %v1205_v45  ;;  %v1212_v47 = vadd.f32 1.0, %v1922_v46 }
 0x600   :  { %1925 = vrcp.f32 %v1212_v47 }
 0x60b   :  { %v1924_v49 = vpop.eup %1923 }
 0x60c   :  { %v1216_v50 = vmul.f32 %v1924_v49, %v1215_v48  ;;  %v2713_v49 = vld [vmem:[#allocation6_spill] sm:$0xff] }
 0x60d   :  { %v1926_v55 = vpop.eup %1925 }
 0x60e   :  { %v1217_v51 = vadd.f32 %v1216_v50, %v2336_v9  ;;  %v1219_v56 = vsub.f32 1.0, %v1926_v55  ;;  %v1221_v60 = vmul.f32 %v1926_v55, %v2543_v16  ;;  %v1950_v9 = vld [vmem:[%s2696_s2 + $0xa8] ss:$12 sps:$4 sm:$0xff]  }
 0x610   :  { %1927 = vtanh.f32 %v1217_v51 }
 0x61d   :  { %v1928_v58 = vpop.eup %1927 }
 0x61e   :  { %v1220_v23 = vmul.f32 %v1928_v58, %v1219_v56 }
 0x620   :  { %v2593_v18 = vadd.f32 %v1221_v60, %v1220_v23 }
 0x622   :  { %1523 = vst [vmem:[%s2699_s5 + $0x28] sm:$0xff] %v2593_v18  ;;  %v1225_v11 = vpack.c.bf16 %v2593_v18, %v2593_v18 }
 0x624   :  { %1259 = vmatmul.mubr.bf16.vlgmr.msra.gmra.mxu0 %v1225_v11  ;;  %1775 = vmatmul.mubr.bf16.vlgmr.msra.gmra.mxu1 %v1225_v11 }
 0x625   :  { %1337 = vmatpush1.bf16.msra.mxu0 %v1950_v9  ;;  %1779 = vmatpush3.bf16.msra.mxu1 %v1951_v53 }
 0x626   :  { %1338 = vmatprep.subr.bf16.mxu0 %v1952_v19  ;;  %1780 = vmatprep.subr.bf16.mxu1 %v2709_v6 }
 0x627   :  { %1368 = vmatprep.mubr.bf16.mxu0 %v2710_v14  ;;  %1794 = vmatprep.mubr.msk.bf16.mxu1 %vm1973_vm0, %v2709_v6  ;;  %v1956_v14 = vld [vmem:[%s2696_s2 + $0x78] ss:$12 sps:$4 sm:$0xff]  }
 0x629   :  { %1339 = vmatpush1.bf16.msra.mxu0 %v1953_v59  ;;  %1781 = vmatpush3.bf16.msra.mxu1 %v1954_v12 }
 0x62a   :  { %1340 = vmatprep.subr.bf16.mxu0 %v1955_v4  ;;  %1782 = vmatprep.subr.bf16.mxu1 %v2709_v6 }
 0x62d   :  { %1341 = vmatpush1.bf16.msra.mxu0 %v1956_v14  ;;  %1783 = vmatpush3.bf16.msra.mxu1 %v1957_v20 }
 0x62e   :  { %1342 = vmatprep.subr.bf16.mxu0 %v1958_v61  ;;  %1784 = vmatprep.subr.bf16.mxu1 %v2709_v6  ;;  %v2714_v61 = vld [vmem:[#allocation4_spill] sm:$0xff] }
 0x631   :  { %1343 = vmatpush1.bf16.msra.mxu0 %v1959_v1  ;;  %1785 = vmatpush3.bf16.msra.mxu1 %v1960_v2 }
 0x632   :  { %1344 = vmatprep.subr.bf16.mxu0 %v1961_v21  ;;  %1786 = vmatprep.subr.bf16.mxu1 %v2709_v6 }
 0x635   :  { %1345 = vmatpush1.bf16.msra.mxu0 %v1962_v37  ;;  %1787 = vmatpush3.bf16.msra.mxu1 %v1963_v63 }
 0x636   :  { %1346 = vmatprep.subr.bf16.mxu0 %v1964_v28  ;;  %1788 = vmatprep.subr.bf16.mxu1 %v2709_v6 }
 0x639   :  { %1347 = vmatpush1.bf16.msra.mxu0 %v1965_v17  ;;  %1789 = vmatpush3.bf16.msra.mxu1 %v1966_v24 }
 0x63a   :  { %1348 = vmatprep.subr.bf16.mxu0 %v1967_v13  ;;  %1790 = vmatprep.subr.bf16.mxu1 %v2709_v6 }
 0x63d   :  { %1349 = vmatpush1.bf16.msra.mxu0 %v1968_v3  ;;  %1791 = vmatpush3.bf16.msra.mxu1 %v2243_v52 }
 0x63e   :  { %1350 = vmatprep.subr.bf16.mxu0 %v1969_v43  ;;  %1792 = vmatprep.subr.bf16.mxu1 %v2709_v6  ;;  %v2711_v6 = vld [vmem:[#allocation5_spill] sm:$0xff] }
 0x641   :  { %1351 = vmatpush1.bf16.msra.mxu0 %v1970_v22  ;;  %1793 = vmatpush3.bf16.msra.mxu1 %v2253_v54 }
 0x6e4   :  { %v1260_v35 = vpop.f32.mrf.mxu0  ;;  %v1301_v57 = vpop.f32.mrf.mxu1 }
 0x6e5   :  { %v1311_v8 = vadd.f32 %v1260_v35, %v2333_v7  ;;  %v1325_v33 = vadd.f32 %v2347_v62, %v1301_v57 }
 0x6e6   :  { %v1262_v15 = vpop.f32.mrf.mxu0  ;;  %v1776_v52 = vpop.f32.mrf.mxu1 }
 0x6e7   :  { %v1524_v0 = vmul.f32 -1.442695, %v1311_v8  ;;  %v1318_v26 = vadd.f32 %v1262_v15, %v2711_v6 }
 0x6e8   :  { %v1264_v10 = vpop.f32.mrf.mxu0  ;;  %v1304_v31 = vpop.f32.mrf.mxu1 }
 0x6e9   :  { %1929 = vpow2.f32 %v1524_v0  ;;  %v1525_v27 = vmul.f32 -1.442695, %v1318_v26 }
 0x6ea   :  { %v1265_v16 = vpop.f32.mrf.mxu0  ;;  %v1777_v5 = vpop.f32.mrf.mxu1 }
 0x6eb   :  { %1931 = vpow2.f32 %v1525_v27 }
 0x6f6   :  { %v1930_v29 = vpop.eup %1929 }
 0x6f7   :  { %v1315_v30 = vadd.f32 1.0, %v1930_v29 }
 0x6f8   :  { %v1932_v54 = vpop.eup %1931 }
 0x6f9   :  { %1933 = vrcp.f32 %v1315_v30  ;;  %v1322_v32 = vadd.f32 1.0, %v1932_v54 }
 0x6fb   :  { %1935 = vrcp.f32 %v1322_v32 }
 0x706   :  { %v1934_v7 = vpop.eup %1933 }
 0x707   :  { %v1326_v34 = vmul.f32 %v1934_v7, %v1325_v33 }
 0x708   :  { %v1936_v39 = vpop.eup %1935 }
 0x709   :  { %v1327_v38 = vadd.f32 %v1326_v34, %v2712_v36  ;;  %v1329_v40 = vsub.f32 1.0, %v1936_v39  ;;  %v1331_v44 = vmul.f32 %v1936_v39, %v2593_v18 }
 0x70b   :  { %1937 = vtanh.f32 %v1327_v38 }
 0x718   :  { %v1938_v41 = vpop.eup %1937 }
 0x719   :  { %v1330_v42 = vmul.f32 %v1938_v41, %v1329_v40 }
 0x71b   :  { %v1332_v45 = vadd.f32 %v1331_v44, %v1330_v42 }
 0x71d   :  { %1526 = vst [vmem:[%s2699_s5 + $0x30] sm:$0xff] %v1332_v45  ;;  %v1335_v46 = vpack.c.bf16 %v1332_v45, %v1332_v45 }
 0x71f   :  { %1369 = vmatmul.mubr.bf16.vlgmr.msra.gmra.mxu0 %v1335_v46  ;;  %1795 = vmatmul.mubr.bf16.vlgmr.msra.gmra.mxu1 %v1335_v46 }
 0x7df   :  { %v1370_v47 = vpop.f32.mrf.mxu0  ;;  %v1411_v48 = vpop.f32.mrf.mxu1 }
 0x7e0   :  { %v1421_v50 = vadd.f32 %v1370_v47, %v2713_v49  ;;  %v1435_v4 = vadd.f32 %v2347_v62, %v1411_v48 }
 0x7e1   :  { %v1372_v51 = vpop.f32.mrf.mxu0  ;;  %v1796_v55 = vpop.f32.mrf.mxu1 }
 0x7e2   :  { %v1527_v56 = vmul.f32 -1.442695, %v1421_v50  ;;  %v1428_v11 = vadd.f32 %v1372_v51, %v2342_v25 }
 0x7e3   :  { %v1374_v58 = vpop.f32.mrf.mxu0  ;;  %v1414_v23 = vpop.f32.mrf.mxu1 }
 0x7e4   :  { %1939 = vpow2.f32 %v1527_v56  ;;  %v1528_v9 = vmul.f32 -1.442695, %v1428_v11 }
 0x7e5   :  { %v1375_v60 = vpop.f32.mrf.mxu0  ;;  %v1797_v18 = vpop.f32.mrf.mxu1 }
 0x7e6   :  { %1941 = vpow2.f32 %v1528_v9 }
 0x7f1   :  { %v1940_v53 = vpop.eup %1939 }
 0x7f2   :  { %v1425_v19 = vadd.f32 1.0, %v1940_v53 }
 0x7f3   :  { %v1942_v59 = vpop.eup %1941 }
 0x7f4   :  { %1943 = vrcp.f32 %v1425_v19  ;;  %v1432_v12 = vadd.f32 1.0, %v1942_v59 }
 0x7f6   :  { %1945 = vrcp.f32 %v1432_v12 }
 0x801   :  { %v1944_v14 = vpop.eup %1943 }
 0x802   :  { %v1436_v20 = vmul.f32 %v1944_v14, %v1435_v4 }
 0x803   :  { %v1946_v2 = vpop.eup %1945 }
 0x804   :  { %v1437_v1 = vadd.f32 %v1436_v20, %v2714_v61  ;;  %v1439_v21 = vsub.f32 1.0, %v1946_v2  ;;  %v1441_v25 = vmul.f32 %v1946_v2, %v1332_v45 }
 0x806   :  { %1947 = vtanh.f32 %v1437_v1 }
 0x813   :  { %v1948_v37 = vpop.eup %1947 }
 0x814   :  { %v1440_v63 = vmul.f32 %v1948_v37, %v1439_v21 }
 0x816   :  { %v1442_v28 = vadd.f32 %v1441_v25, %v1440_v63 }
 0x818   :  { %1529 = vst [vmem:[%s2699_s5 + $0x38] sm:$0xff] %v1442_v28  ;;  %1445 = vst [vmem:[%s2700_s6] sm:$0xff] %v1442_v28 }

</bundles_post_ra>
